<compile_context>
chip_gen: v5e
topology: v5e:2x2
jax: 0.10.0
libtpu: 0.0.40
codegen_flags: <defaults>
</compile_context>

<pallas_src>
import functools
import math

import jax
import jax.numpy as jnp
from jax.experimental import pallas as pl
from jax.experimental.pallas import tpu as pltpu

_PAR = pltpu.CompilerParams(dimension_semantics=("parallel",))
_ARB = pltpu.CompilerParams(dimension_semantics=("arbitrary",))


# ---------------------------- Pallas kernels ----------------------------

def _conv_kernel(*refs, K, stride, act, n_in):
    """KxK conv (stride>=1, 'same' padding for odd K) as ONE im2col MXU matmul.

    Supports multiple input refs whose channels are concatenated (split-K over
    channel groups without an XLA concat). Padding happens in a VMEM scratch.
    """
    in_refs = refs[:n_in]
    w_ref, b_ref, o_ref = refs[n_in], refs[n_in + 1], refs[n_in + 2]
    _, Ho, Wo, Cout = o_ref.shape
    p = K // 2  # NOTE: 'same' padding only for odd K (only k=1,3 are used)

    if K > 1:
        pad_ref, patch_ref = refs[n_in + 3], refs[n_in + 4]
        # zero-init padded scratch, then fill interior with (concatenated) inputs
        pad_ref[...] = jnp.zeros_like(pad_ref)
        off = 0
        for r in in_refs:
            c = r.shape[-1]
            pad_ref[p:p + r.shape[1], p:p + r.shape[2], off:off + c] = r[0]
            off += c
        ctot = off
        # im2col: one shifted (optionally strided) slice per tap, packed into a
        # bf16 patch matrix in VMEM -> single matmul with contraction K*K*Cin.
        for kh in range(K):
            for kw in range(K):
                if stride == 1:
                    v = pad_ref[kh:kh + Ho, kw:kw + Wo, :]
                else:
                    v = pad_ref[pl.ds(kh, Ho, stride=stride),
                                pl.ds(kw, Wo, stride=stride), :]
                t = kh * K + kw
                patch_ref[:, t * ctot:(t + 1) * ctot] = (
                    v.reshape(Ho * Wo, ctot).astype(jnp.bfloat16))
        patches = patch_ref[...]
    else:
        parts = []
        for r in in_refs:
            if stride == 1:
                v = r[0]
            else:
                v = r[0, pl.ds(0, Ho, stride=stride),
                      pl.ds(0, Wo, stride=stride), :]
            parts.append(v.reshape(Ho * Wo, r.shape[-1]).astype(jnp.bfloat16))
        patches = parts[0] if len(parts) == 1 else jnp.concatenate(parts, axis=-1)

    acc = jnp.dot(patches, w_ref[...], preferred_element_type=jnp.float32)
    acc = acc + b_ref[...]
    if act == "relu":
        acc = jnp.maximum(acc, 0.0)
    elif act == "tanh":
        acc = jnp.tanh(acc)
    o_ref[0] = acc.reshape(Ho, Wo, Cout)


def _eit_kernel(x_ref, w1_ref, b1_ref, w2_ref, b2_ref, wr_ref, o_ref,
                pad1, pad2, patch1, patch2):
    """Fused EITConv: conv3x3+ReLU -> conv3x3, plus 1x1 (no-bias) residual.

    The intermediate activation never leaves VMEM (no HBM round-trip, no XLA pad).
    """
    _, H, W, Cout = o_ref.shape
    Cin = x_ref.shape[-1]
    Cmid = b1_ref.shape[-1]

    # ---- conv1 (3x3) + ReLU, im2col single matmul ----
    pad1[...] = jnp.zeros_like(pad1)
    pad1[1:H + 1, 1:W + 1, :] = x_ref[0]
    for kh in range(3):
        for kw in range(3):
            t = kh * 3 + kw
            patch1[:, t * Cin:(t + 1) * Cin] = (
                pad1[kh:kh + H, kw:kw + W, :].reshape(H * W, Cin)
                .astype(jnp.bfloat16))
    h = jnp.dot(patch1[...], w1_ref[...],
                preferred_element_type=jnp.float32) + b1_ref[...]
    h = jnp.maximum(h, 0.0)

    # ---- conv2 (3x3) on h, kept entirely in VMEM ----
    pad2[...] = jnp.zeros_like(pad2)
    pad2[1:H + 1, 1:W + 1, :] = h.reshape(H, W, Cmid)
    for kh in range(3):
        for kw in range(3):
            t = kh * 3 + kw
            patch2[:, t * Cmid:(t + 1) * Cmid] = (
                pad2[kh:kh + H, kw:kw + W, :].reshape(H * W, Cmid)
                .astype(jnp.bfloat16))
    acc = jnp.dot(patch2[...], w2_ref[...],
                  preferred_element_type=jnp.float32) + b2_ref[...]

    # ---- 1x1 residual upsampler (no bias), fused add ----
    res = jnp.dot(x_ref[0].reshape(H * W, Cin).astype(jnp.bfloat16), wr_ref[...],
                  preferred_element_type=jnp.float32)
    o_ref[0] = (acc + res).reshape(H, W, Cout)


def _convtrans2x2_kernel(x_ref, w_ref, b_ref, o_ref):
    """ConvTranspose2d(k=2, stride=2) == one matmul producing all 4 taps.

    Output block is (1, H, 2, W, 2*Cout); the wrapper reshape to (B,2H,2W,Cout)
    is contiguous, so the spatial interleave is done here with plain stores.
    """
    _, H, W, Cin = x_ref.shape
    Cout4 = w_ref.shape[-1]            # 4 * Cout, column order (a, b, co)
    xf = x_ref[0].reshape(H * W, Cin).astype(jnp.bfloat16)
    y = jnp.dot(xf, w_ref[...], preferred_element_type=jnp.float32)
    y = (y + b_ref[...]).reshape(H, W, Cout4)
    half = Cout4 // 2
    o_ref[0, :, 0, :, :] = y[:, :, :half]    # output rows 2i   -> taps (a=0, b, co)
    o_ref[0, :, 1, :, :] = y[:, :, half:]    # output rows 2i+1 -> taps (a=1, b, co)


def _bilinear_kernel(ph_ref, pwt_ref, x_ref, o_ref):
    """Separable bilinear (align_corners=True): W matmul then H matmul."""
    _, Hs, Ws, C = x_ref.shape
    _, Ho, Wo, _ = o_ref.shape
    x = x_ref[0]
    # W interpolation: (Hs*C, Ws) @ (Ws, Wo)
    xt = jnp.transpose(x, (0, 2, 1)).reshape(Hs * C, Ws)
    xw = jnp.dot(xt, pwt_ref[...], preferred_element_type=jnp.float32)
    xw = jnp.transpose(xw.reshape(Hs, C, Wo), (0, 2, 1))        # (Hs, Wo, C)
    # H interpolation: (Ho, Hs) @ (Hs, Wo*C)
    out = jnp.dot(ph_ref[...], xw.reshape(Hs, Wo * C),
                  preferred_element_type=jnp.float32)
    o_ref[0] = out.reshape(Ho, Wo, C)


def _bn_stats_kernel(x_ref, w_ref, b_ref, stats_ref):
    """Pass 1 of self.pointwise: per-channel sum / sumsq of the 1x1 conv output."""
    @pl.when(pl.program_id(0) == 0)
    def _():
        stats_ref[...] = jnp.zeros_like(stats_ref)

    _, H, W, Cin = x_ref.shape
    y = jnp.dot(x_ref[0].reshape(H * W, Cin), w_ref[...],
                preferred_element_type=jnp.float32) + b_ref[...]
    stats_ref[0:1, :] = stats_ref[0:1, :] + jnp.sum(y, axis=0, keepdims=True)
    stats_ref[1:2, :] = stats_ref[1:2, :] + jnp.sum(y * y, axis=0, keepdims=True)


def _bn_apply_kernel(x_ref, w_ref, b_ref, g_ref, beta_ref, stats_ref, o_ref, *,
                     count):
    """Pass 2: recompute the tiny 1x1 conv and apply BN (batch stats) + ReLU."""
    _, H, W, Cin = x_ref.shape
    Cout = o_ref.shape[-1]
    y = jnp.dot(x_ref[0].reshape(H * W, Cin), w_ref[...],
                preferred_element_type=jnp.float32) + b_ref[...]
    inv_n = 1.0 / count
    mean = stats_ref[0:1, :] * inv_n
    var = stats_ref[1:2, :] * inv_n - mean * mean
    yn = (y - mean) * jax.lax.rsqrt(var + 1e-5)
    out = jnp.maximum(yn * g_ref[...] + beta_ref[...], 0.0)
    o_ref[0] = out.reshape(H, W, Cout)


# ---------------------------- wrappers (glue) ----------------------------

def conv2d(inputs, w_taps, b, k, act=None, stride=1):
    """inputs: tensor or list of tensors (channels concatenated inside kernel)."""
    if not isinstance(inputs, (list, tuple)):
        inputs = [inputs]
    B, H, W, _ = inputs[0].shape
    ctot = sum(t.shape[-1] for t in inputs)
    Cout = w_taps.shape[-1]
    Ho, Wo = H // stride, W // stride
    p = k // 2
    wf = w_taps.reshape(k * k * ctot, Cout).astype(jnp.bfloat16)

    in_specs = [pl.BlockSpec((1, t.shape[1], t.shape[2], t.shape[3]),
                             lambda i: (i, 0, 0, 0)) for t in inputs]
    in_specs += [pl.BlockSpec((k * k * ctot, Cout), lambda i: (0, 0)),
                 pl.BlockSpec((1, Cout), lambda i: (0, 0))]
    scratch = []
    if k > 1:
        scratch = [pltpu.VMEM((H + 2 * p, W + 2 * p, ctot), jnp.float32),
                   pltpu.VMEM((Ho * Wo, k * k * ctot), jnp.bfloat16)]

    return pl.pallas_call(
        functools.partial(_conv_kernel, K=k, stride=stride, act=act,
                          n_in=len(inputs)),
        out_shape=jax.ShapeDtypeStruct((B, Ho, Wo, Cout), jnp.float32),
        grid=(B,),
        in_specs=in_specs,
        out_specs=pl.BlockSpec((1, Ho, Wo, Cout), lambda i: (i, 0, 0, 0)),
        scratch_shapes=scratch,
        compiler_params=_PAR,
    )(*inputs, wf, b)


def eit_conv(x, p):
    """EITConv.forward, fully fused in a single pallas_call."""
    B, H, W, Cin = x.shape
    Cmid = p["b1"].shape[-1]
    Cout = p["b2"].shape[-1]
    w1 = p["w1"].reshape(9 * Cin, Cmid).astype(jnp.bfloat16)
    w2 = p["w2"].reshape(9 * Cmid, Cout).astype(jnp.bfloat16)
    wr = p["wr"].astype(jnp.bfloat16)
    return pl.pallas_call(
        _eit_kernel,
        out_shape=jax.ShapeDtypeStruct((B, H, W, Cout), jnp.float32),
        grid=(B,),
        in_specs=[
            pl.BlockSpec((1, H, W, Cin), lambda i: (i, 0, 0, 0)),
            pl.BlockSpec((9 * Cin, Cmid), lambda i: (0, 0)),
            pl.BlockSpec((1, Cmid), lambda i: (0, 0)),
            pl.BlockSpec((9 * Cmid, Cout), lambda i: (0, 0)),
            pl.BlockSpec((1, Cout), lambda i: (0, 0)),
            pl.BlockSpec((Cin, Cout), lambda i: (0, 0)),
        ],
        out_specs=pl.BlockSpec((1, H, W, Cout), lambda i: (i, 0, 0, 0)),
        scratch_shapes=[
            pltpu.VMEM((H + 2, W + 2, Cin), jnp.float32),
            pltpu.VMEM((H + 2, W + 2, Cmid), jnp.float32),
            pltpu.VMEM((H * W, 9 * Cin), jnp.bfloat16),
            pltpu.VMEM((H * W, 9 * Cmid), jnp.bfloat16),
        ],
        compiler_params=_PAR,
    )(x, w1, p["b1"], w2, p["b2"], wr)


def conv_transpose2x2(x, w_taps, b):
    """ConvTranspose2d(kernel=2, stride=2).

    NOTE for real PyTorch weights (shape Cin,Cout,2,2): tap t = 2*a + b must be
    w[:, :, a, b], i.e. w_taps[t] == weight[:, :, t // 2, t % 2].
    """
    B, H, W, Cin = x.shape
    Cout = w_taps.shape[-1]
    # column order (a, b, co) so that tap t*Cout + co lines up with the output layout
    wf = jnp.transpose(w_taps, (1, 0, 2)).reshape(Cin, 4 * Cout).astype(jnp.bfloat16)
    b4 = jnp.tile(b, (1, 4))
    y = pl.pallas_call(
        _convtrans2x2_kernel,
        out_shape=jax.ShapeDtypeStruct((B, H, 2, W, 2 * Cout), jnp.float32),
        grid=(B,),
        in_specs=[
            pl.BlockSpec((1, H, W, Cin), lambda i: (i, 0, 0, 0)),
            pl.BlockSpec((Cin, 4 * Cout), lambda i: (0, 0)),
            pl.BlockSpec((1, 4 * Cout), lambda i: (0, 0)),
        ],
        out_specs=pl.BlockSpec((1, H, 2, W, 2 * Cout), lambda i: (i, 0, 0, 0, 0)),
        compiler_params=_PAR,
    )(x, wf, b4)
    # contiguous reshape (free) -> interleaved (B, 2H, 2W, Cout)
    return y.reshape(B, 2 * H, 2 * W, Cout)


def _interp_matrix(n_out, n_in):
    # PyTorch F.interpolate(mode='bilinear', align_corners=True) weights (1D).
    i = jnp.arange(n_out, dtype=jnp.float32)
    denom = max(n_out - 1, 1)
    src = i * (n_in - 1) / denom
    i0 = jnp.clip(jnp.floor(src).astype(jnp.int32), 0, n_in - 1)
    i1 = jnp.clip(i0 + 1, 0, n_in - 1)
    w1 = src - i0.astype(jnp.float32)
    w0 = 1.0 - w1
    rows = jnp.arange(n_out)
    P = jnp.zeros((n_out, n_in), jnp.float32)
    P = P.at[rows, i0].add(w0)
    P = P.at[rows, i1].add(w1)
    return P


def bilinear_upsample(x, Ho, Wo):
    B, Hs, Ws, C = x.shape
    Ph = _interp_matrix(Ho, Hs)            # (Ho, Hs)
    PwT = _interp_matrix(Wo, Ws).T         # (Ws, Wo)
    return pl.pallas_call(
        _bilinear_kernel,
        out_shape=jax.ShapeDtypeStruct((B, Ho, Wo, C), jnp.float32),
        grid=(B,),
        in_specs=[
            pl.BlockSpec((Ho, Hs), lambda i: (0, 0)),
            pl.BlockSpec((Ws, Wo), lambda i: (0, 0)),
            pl.BlockSpec((1, Hs, Ws, C), lambda i: (i, 0, 0, 0)),
        ],
        out_specs=pl.BlockSpec((1, Ho, Wo, C), lambda i: (i, 0, 0, 0)),
        compiler_params=_PAR,
    )(Ph, PwT, x)


def pointwise_bn_relu(x, w, b, gamma, beta):
    """self.pointwise: 1x1 conv + BatchNorm2d (training-mode batch stats) + ReLU.

    Two gridded passes: (1) accumulate per-channel sum/sumsq, (2) normalize.
    TODO(synk): eval-mode BN (running stats) would skip pass 1.
    """
    B, H, W, Cin = x.shape
    Cout = w.shape[-1]
    stats = pl.pallas_call(
        _bn_stats_kernel,
        out_shape=jax.ShapeDtypeStruct((2, Cout), jnp.float32),
        grid=(B,),
        in_specs=[
            pl.BlockSpec((1, H, W, Cin), lambda i: (i, 0, 0, 0)),
            pl.BlockSpec((Cin, Cout), lambda i: (0, 0)),
            pl.BlockSpec((1, Cout), lambda i: (0, 0)),
        ],
        out_specs=pl.BlockSpec((2, Cout), lambda i: (0, 0)),
        compiler_params=_ARB,
    )(x, w, b)
    return pl.pallas_call(
        functools.partial(_bn_apply_kernel, count=B * H * W),
        out_shape=jax.ShapeDtypeStruct((B, H, W, Cout), jnp.float32),
        grid=(B,),
        in_specs=[
            pl.BlockSpec((1, H, W, Cin), lambda i: (i, 0, 0, 0)),
            pl.BlockSpec((Cin, Cout), lambda i: (0, 0)),
            pl.BlockSpec((1, Cout), lambda i: (0, 0)),
            pl.BlockSpec((1, Cout), lambda i: (0, 0)),
            pl.BlockSpec((1, Cout), lambda i: (0, 0)),
            pl.BlockSpec((2, Cout), lambda i: (0, 0)),
        ],
        out_specs=pl.BlockSpec((1, H, W, Cout), lambda i: (i, 0, 0, 0)),
        compiler_params=_PAR,
    )(x, w, b, gamma, beta, stats)


# ---------------------------- parameters ----------------------------

def _init_conv_taps(key, k, cin, cout):
    s = 1.0 / math.sqrt(cin * k * k)
    return s * jax.random.normal(key, (k * k, cin, cout), jnp.float32)


def _init_bias(key, cout):
    return 0.01 * jax.random.normal(key, (1, cout), jnp.float32)


def init_params(key, num_classes=21):
    ks = iter(jax.random.split(key, 32))
    p = {}
    # --- stand-ins (channel counts shrunk for a toy run; interface preserved) ---
    p["bb1_w"] = _init_conv_taps(next(ks), 3, 3, 16);  p["bb1_b"] = _init_bias(next(ks), 16)
    p["bb2_w"] = _init_conv_taps(next(ks), 3, 16, 32); p["bb2_b"] = _init_bias(next(ks), 32)
    p["aspp_w"] = _init_conv_taps(next(ks), 1, 32, 32); p["aspp_b"] = _init_bias(next(ks), 32)
    p["dec_red_w"] = _init_conv_taps(next(ks), 1, 16, 8); p["dec_red_b"] = _init_bias(next(ks), 8)
    p["dec_w"] = _init_conv_taps(next(ks), 3, 40, num_classes); p["dec_b"] = _init_bias(next(ks), num_classes)
    p["sr_red_w"] = _init_conv_taps(next(ks), 1, 16, 8); p["sr_red_b"] = _init_bias(next(ks), 8)
    p["sr_w"] = _init_conv_taps(next(ks), 3, 40, 64); p["sr_b"] = _init_bias(next(ks), 64)
    # --- exact head parameters ---
    p["pw_w"] = _init_conv_taps(next(ks), 1, num_classes, 3)[0]      # Conv2d(num_classes, 3, 1)
    p["pw_b"] = _init_bias(next(ks), 3)
    p["pw_g"] = jnp.ones((1, 3), jnp.float32)                        # BatchNorm2d(3) affine
    p["pw_beta"] = jnp.zeros((1, 3), jnp.float32)
    p["up1_w"] = (1.0 / math.sqrt(64 * 4)) * jax.random.normal(next(ks), (4, 64, 64), jnp.float32)
    p["up1_b"] = _init_bias(next(ks), 64)                            # ConvTranspose2d(64,64,2,2)
    p["eit1"] = {"w1": _init_conv_taps(next(ks), 3, 64, 64), "b1": _init_bias(next(ks), 64),
                 "w2": _init_conv_taps(next(ks), 3, 64, 64), "b2": _init_bias(next(ks), 64),
                 "wr": (1.0 / math.sqrt(64)) * jax.random.normal(next(ks), (64, 64), jnp.float32)}
    p["up2_w"] = (1.0 / math.sqrt(64 * 4)) * jax.random.normal(next(ks), (4, 64, 32), jnp.float32)
    p["up2_b"] = _init_bias(next(ks), 32)                            # ConvTranspose2d(64,32,2,2)
    p["eit2"] = {"w1": _init_conv_taps(next(ks), 3, 32, 32), "b1": _init_bias(next(ks), 32),
                 "w2": _init_conv_taps(next(ks), 3, 32, 32), "b2": _init_bias(next(ks), 32),
                 "wr": (1.0 / math.sqrt(32)) * jax.random.normal(next(ks), (32, 32), jnp.float32)}
    p["last_w"] = _init_conv_taps(next(ks), 1, 32, 3)                # Conv2d(32, 3, 1)
    p["last_b"] = _init_bias(next(ks), 3)
    return p


# ---------------------------- forward ----------------------------

def deeplab_dual_v2_forward(params, x_nchw):
    B, _, Hin, Win = x_nchw.shape
    x = jnp.transpose(x_nchw, (0, 2, 3, 1)).astype(jnp.float32)  # -> NHWC

    # TODO(synk): build_backbone / build_aspp / build_decoder / build_im_recon_decoder
    # sources were not provided; small conv stand-ins preserve the interface
    # (stride-16 feature, stride-4 low-level feature, num_classes seg logits,
    # 64-channel SR decoder feature). Stride-4 downsampling is computed inside
    # the conv kernels (identical to conv-then-[::4], without the 16x waste).
    low = conv2d(x, params["bb1_w"], params["bb1_b"], 3, act="relu", stride=4)
    hi = conv2d(low, params["bb2_w"], params["bb2_b"], 3, act="relu", stride=4)
    xa = conv2d(hi, params["aspp_w"], params["aspp_b"], 1, act="relu")

    xa_up = bilinear_upsample(xa, low.shape[1], low.shape[2])
    low_red = conv2d(low, params["dec_red_w"], params["dec_red_b"], 1, act="relu")
    # decoder convs consume (xa_up ++ reduced low-level feat) with no XLA concat
    x_seg = conv2d([xa_up, low_red], params["dec_w"], params["dec_b"], 3, act=None)
    sr_red = conv2d(low, params["sr_red_w"], params["sr_red_b"], 1, act="relu")
    x_sr = conv2d([xa_up, sr_red], params["sr_w"], params["sr_b"], 3, act="relu")

    # ---- exact head semantics of DeepLab_Dual_V2.forward ----
    x_seg_up = bilinear_upsample(x_seg, Hin, Win)                            # F.interpolate(align_corners=True)
    x_sr_up = conv_transpose2x2(x_sr, params["up1_w"], params["up1_b"])      # up_sr_1
    x_sr_up = eit_conv(x_sr_up, params["eit1"])                              # up_edsr_1
    x_sr_up = conv_transpose2x2(x_sr_up, params["up2_w"], params["up2_b"])   # up_sr_2
    x_sr_up = eit_conv(x_sr_up, params["eit2"])                              # up_edsr_2
    x_sr_up = conv2d(x_sr_up, params["last_w"], params["last_b"], 1, act="tanh")  # tanh(up_conv_last)
    pw = pointwise_bn_relu(x_seg_up, params["pw_w"], params["pw_b"],
                           params["pw_g"], params["pw_beta"])                # self.pointwise

    to_nchw = lambda t: jnp.transpose(t, (0, 3, 1, 2))
    return to_nchw(x_seg_up), to_nchw(x_sr_up), to_nchw(pw), to_nchw(x_sr_up)


if __name__ == "__main__":
    key = jax.random.PRNGKey(0)
    pkey, xkey = jax.random.split(key)
    params = init_params(pkey, num_classes=21)
    x = jax.random.normal(xkey, (2, 3, 32, 32), jnp.float32)   # NCHW like PyTorch
    outs = deeplab_dual_v2_forward(params, x)
    outs = jax.block_until_ready(outs)
    assert outs[0].shape == (2, 21, 32, 32)   # x_seg_up
    assert outs[1].shape == (2, 3, 32, 32)    # x_sr_up
    assert outs[2].shape == (2, 3, 32, 32)    # pointwise(x_seg_up)
    assert outs[3].shape == (2, 3, 32, 32)    # x_sr_up (returned twice)
    print("KERNEL_OK")
</pallas_src>

<mosaic_0001>
module attributes {stable_mosaic.version = 11 : i64} {
  func.func @_conv_kernel(%arg0: i32, %arg1: memref<1x32x32x3xf32, #tpu.memory_space<vmem>>, %arg2: memref<27x16xbf16, #tpu.memory_space<vmem>>, %arg3: memref<1x16xf32, #tpu.memory_space<vmem>>, %arg4: memref<1x8x8x16xf32, #tpu.memory_space<vmem>>, %arg5: memref<34x34x3xf32, #tpu.memory_space<vmem>>, %arg6: memref<64x27xbf16, #tpu.memory_space<vmem>>) attributes {dimension_semantics = [#tpu.dimension_semantics<parallel>], iteration_bounds = array<i64: 2>, scalar_prefetch = 0 : i64, scratch_operands = 2 : i64, tpu.core_type = #tpu.core_type<tc>, window_params = [{transform_indices = @transform_0, window_bounds = array<i64: 1, 32, 32, 3>}, {pipeline_mode = #tpu.pipeline_mode<synchronous>, transform_indices = @transform_1, window_bounds = array<i64: 27, 16>}, {pipeline_mode = #tpu.pipeline_mode<synchronous>, transform_indices = @transform_2, window_bounds = array<i64: 1, 16>}, {transform_indices = @transform_3, window_bounds = array<i64: 1, 8, 8, 16>}]} {
    %cst = arith.constant 0.000000e+00 : f32
    %0 = vector.broadcast %cst : f32 to vector<34x34x3xf32>
    %c0 = arith.constant 0 : index
    %c0_0 = arith.constant 0 : index
    %c0_1 = arith.constant 0 : index
    %1 = vector.load %arg5[%c0, %c0_0, %c0_1] : memref<34x34x3xf32, #tpu.memory_space<vmem>>, vector<34x34x3xf32>
    tpu.vector_store %arg5[%c0, %c0_0, %c0_1], %0 {strides = array<i32>} : memref<34x34x3xf32, #tpu.memory_space<vmem>>, vector<34x34x3xf32>,
    %c0_2 = arith.constant 0 : index
    %c0_3 = arith.constant 0 : index
    %c0_4 = arith.constant 0 : index
    %c0_5 = arith.constant 0 : index
    %2 = vector.load %arg1[%c0_2, %c0_3, %c0_4, %c0_5] : memref<1x32x32x3xf32, #tpu.memory_space<vmem>>, vector<1x32x32x3xf32>
    %3 = vector.shape_cast %2 : vector<1x32x32x3xf32> to vector<32x32x3xf32>
    %c1 = arith.constant 1 : index
    %c1_6 = arith.constant 1 : index
    %c0_7 = arith.constant 0 : index
    %4 = vector.load %arg5[%c1, %c1_6, %c0_7] : memref<34x34x3xf32, #tpu.memory_space<vmem>>, vector<32x32x3xf32>
    tpu.vector_store %arg5[%c1, %c1_6, %c0_7], %3 {strides = array<i32>} : memref<34x34x3xf32, #tpu.memory_space<vmem>>, vector<32x32x3xf32>,
    %c0_8 = arith.constant 0 : index
    %c0_9 = arith.constant 0 : index
    %c0_10 = arith.constant 0 : index
    %5 = tpu.strided_load %arg5[%c0_8, %c0_9, %c0_10] {strides = array<i32: 4, 4, 1>} : memref<34x34x3xf32, #tpu.memory_space<vmem>>, vector<8x8x3xf32>
    %6 = vector.shape_cast %5 : vector<8x8x3xf32> to vector<64x3xf32>
    %7 = arith.truncf %6 : vector<64x3xf32> to vector<64x3xbf16>
    %c0_11 = arith.constant 0 : index
    %c0_12 = arith.constant 0 : index
    %8 = vector.load %arg6[%c0_11, %c0_12] : memref<64x27xbf16, #tpu.memory_space<vmem>>, vector<64x3xbf16>
    tpu.vector_store %arg6[%c0_11, %c0_12], %7 {strides = array<i32>} : memref<64x27xbf16, #tpu.memory_space<vmem>>, vector<64x3xbf16>,
    %c0_13 = arith.constant 0 : index
    %c1_14 = arith.constant 1 : index
    %c0_15 = arith.constant 0 : index
    %9 = tpu.strided_load %arg5[%c0_13, %c1_14, %c0_15] {strides = array<i32: 4, 4, 1>} : memref<34x34x3xf32, #tpu.memory_space<vmem>>, vector<8x8x3xf32>
    %10 = vector.shape_cast %9 : vector<8x8x3xf32> to vector<64x3xf32>
    %11 = arith.truncf %10 : vector<64x3xf32> to vector<64x3xbf16>
    %c0_16 = arith.constant 0 : index
    %c3 = arith.constant 3 : index
    %12 = vector.load %arg6[%c0_16, %c3] : memref<64x27xbf16, #tpu.memory_space<vmem>>, vector<64x3xbf16>
    tpu.vector_store %arg6[%c0_16, %c3], %11 {strides = array<i32>} : memref<64x27xbf16, #tpu.memory_space<vmem>>, vector<64x3xbf16>,
    %c0_17 = arith.constant 0 : index
    %c2 = arith.constant 2 : index
    %c0_18 = arith.constant 0 : index
    %13 = tpu.strided_load %arg5[%c0_17, %c2, %c0_18] {strides = array<i32: 4, 4, 1>} : memref<34x34x3xf32, #tpu.memory_space<vmem>>, vector<8x8x3xf32>
    %14 = vector.shape_cast %13 : vector<8x8x3xf32> to vector<64x3xf32>
    %15 = arith.truncf %14 : vector<64x3xf32> to vector<64x3xbf16>
    %c0_19 = arith.constant 0 : index
    %c6 = arith.constant 6 : index
    %16 = vector.load %arg6[%c0_19, %c6] : memref<64x27xbf16, #tpu.memory_space<vmem>>, vector<64x3xbf16>
    tpu.vector_store %arg6[%c0_19, %c6], %15 {strides = array<i32>} : memref<64x27xbf16, #tpu.memory_space<vmem>>, vector<64x3xbf16>,
    %c1_20 = arith.constant 1 : index
    %c0_21 = arith.constant 0 : index
    %c0_22 = arith.constant 0 : index
    %17 = tpu.strided_load %arg5[%c1_20, %c0_21, %c0_22] {strides = array<i32: 4, 4, 1>} : memref<34x34x3xf32, #tpu.memory_space<vmem>>, vector<8x8x3xf32>
    %18 = vector.shape_cast %17 : vector<8x8x3xf32> to vector<64x3xf32>
    %19 = arith.truncf %18 : vector<64x3xf32> to vector<64x3xbf16>
    %c0_23 = arith.constant 0 : index
    %c9 = arith.constant 9 : index
    %20 = vector.load %arg6[%c0_23, %c9] : memref<64x27xbf16, #tpu.memory_space<vmem>>, vector<64x3xbf16>
    tpu.vector_store %arg6[%c0_23, %c9], %19 {strides = array<i32>} : memref<64x27xbf16, #tpu.memory_space<vmem>>, vector<64x3xbf16>,
    %c1_24 = arith.constant 1 : index
    %c1_25 = arith.constant 1 : index
    %c0_26 = arith.constant 0 : index
    %21 = tpu.strided_load %arg5[%c1_24, %c1_25, %c0_26] {strides = array<i32: 4, 4, 1>} : memref<34x34x3xf32, #tpu.memory_space<vmem>>, vector<8x8x3xf32>
    %22 = vector.shape_cast %21 : vector<8x8x3xf32> to vector<64x3xf32>
    %23 = arith.truncf %22 : vector<64x3xf32> to vector<64x3xbf16>
    %c0_27 = arith.constant 0 : index
    %c12 = arith.constant 12 : index
    %24 = vector.load %arg6[%c0_27, %c12] : memref<64x27xbf16, #tpu.memory_space<vmem>>, vector<64x3xbf16>
    tpu.vector_store %arg6[%c0_27, %c12], %23 {strides = array<i32>} : memref<64x27xbf16, #tpu.memory_space<vmem>>, vector<64x3xbf16>,
    %c1_28 = arith.constant 1 : index
    %c2_29 = arith.constant 2 : index
    %c0_30 = arith.constant 0 : index
    %25 = tpu.strided_load %arg5[%c1_28, %c2_29, %c0_30] {strides = array<i32: 4, 4, 1>} : memref<34x34x3xf32, #tpu.memory_space<vmem>>, vector<8x8x3xf32>
    %26 = vector.shape_cast %25 : vector<8x8x3xf32> to vector<64x3xf32>
    %27 = arith.truncf %26 : vector<64x3xf32> to vector<64x3xbf16>
    %c0_31 = arith.constant 0 : index
    %c15 = arith.constant 15 : index
    %28 = vector.load %arg6[%c0_31, %c15] : memref<64x27xbf16, #tpu.memory_space<vmem>>, vector<64x3xbf16>
    tpu.vector_store %arg6[%c0_31, %c15], %27 {strides = array<i32>} : memref<64x27xbf16, #tpu.memory_space<vmem>>, vector<64x3xbf16>,
    %c2_32 = arith.constant 2 : index
    %c0_33 = arith.constant 0 : index
    %c0_34 = arith.constant 0 : index
    %29 = tpu.strided_load %arg5[%c2_32, %c0_33, %c0_34] {strides = array<i32: 4, 4, 1>} : memref<34x34x3xf32, #tpu.memory_space<vmem>>, vector<8x8x3xf32>
    %30 = vector.shape_cast %29 : vector<8x8x3xf32> to vector<64x3xf32>
    %31 = arith.truncf %30 : vector<64x3xf32> to vector<64x3xbf16>
    %c0_35 = arith.constant 0 : index
    %c18 = arith.constant 18 : index
    %32 = vector.load %arg6[%c0_35, %c18] : memref<64x27xbf16, #tpu.memory_space<vmem>>, vector<64x3xbf16>
    tpu.vector_store %arg6[%c0_35, %c18], %31 {strides = array<i32>} : memref<64x27xbf16, #tpu.memory_space<vmem>>, vector<64x3xbf16>,
    %c2_36 = arith.constant 2 : index
    %c1_37 = arith.constant 1 : index
    %c0_38 = arith.constant 0 : index
    %33 = tpu.strided_load %arg5[%c2_36, %c1_37, %c0_38] {strides = array<i32: 4, 4, 1>} : memref<34x34x3xf32, #tpu.memory_space<vmem>>, vector<8x8x3xf32>
    %34 = vector.shape_cast %33 : vector<8x8x3xf32> to vector<64x3xf32>
    %35 = arith.truncf %34 : vector<64x3xf32> to vector<64x3xbf16>
    %c0_39 = arith.constant 0 : index
    %c21 = arith.constant 21 : index
    %36 = vector.load %arg6[%c0_39, %c21] : memref<64x27xbf16, #tpu.memory_space<vmem>>, vector<64x3xbf16>
    tpu.vector_store %arg6[%c0_39, %c21], %35 {strides = array<i32>} : memref<64x27xbf16, #tpu.memory_space<vmem>>, vector<64x3xbf16>,
    %c2_40 = arith.constant 2 : index
    %c2_41 = arith.constant 2 : index
    %c0_42 = arith.constant 0 : index
    %37 = tpu.strided_load %arg5[%c2_40, %c2_41, %c0_42] {strides = array<i32: 4, 4, 1>} : memref<34x34x3xf32, #tpu.memory_space<vmem>>, vector<8x8x3xf32>
    %38 = vector.shape_cast %37 : vector<8x8x3xf32> to vector<64x3xf32>
    %39 = arith.truncf %38 : vector<64x3xf32> to vector<64x3xbf16>
    %c0_43 = arith.constant 0 : index
    %c24 = arith.constant 24 : index
    %40 = vector.load %arg6[%c0_43, %c24] : memref<64x27xbf16, #tpu.memory_space<vmem>>, vector<64x3xbf16>
    tpu.vector_store %arg6[%c0_43, %c24], %39 {strides = array<i32>} : memref<64x27xbf16, #tpu.memory_space<vmem>>, vector<64x3xbf16>,
    %c0_44 = arith.constant 0 : index
    %c0_45 = arith.constant 0 : index
    %41 = vector.load %arg6[%c0_44, %c0_45] : memref<64x27xbf16, #tpu.memory_space<vmem>>, vector<64x27xbf16>
    %c0_46 = arith.constant 0 : index
    %c0_47 = arith.constant 0 : index
    %42 = vector.load %arg2[%c0_46, %c0_47] : memref<27x16xbf16, #tpu.memory_space<vmem>>, vector<27x16xbf16>
    %cst_48 = arith.constant dense<0.000000e+00> : vector<64x16xf32>
    %43 = tpu.matmul %41, %42, %cst_48 {dimension_numbers = #tpu.dot_dimension_numbers<[1], [0], [0], [1], [0, 0, 1, 1], [], []>} : vector<64x27xbf16>, vector<27x16xbf16>, vector<64x16xf32> -> vector<64x16xf32>
    %c0_49 = arith.constant 0 : index
    %c0_50 = arith.constant 0 : index
    %44 = vector.load %arg3[%c0_49, %c0_50] : memref<1x16xf32, #tpu.memory_space<vmem>>, vector<1x16xf32>
    %45 = vector.broadcast %44 : vector<1x16xf32> to vector<64x16xf32>
    %46 = arith.addf %43, %45 : vector<64x16xf32>
    %cst_51 = arith.constant 0.000000e+00 : f32
    %47 = vector.broadcast %cst_51 : f32 to vector<64x16xf32>
    %48 = arith.maximumf %46, %47 : vector<64x16xf32>
    %49 = vector.shape_cast %48 : vector<64x16xf32> to vector<8x8x16xf32>
    %c0_52 = arith.constant 0 : index
    %c0_53 = arith.constant 0 : index
    %c0_54 = arith.constant 0 : index
    %c0_55 = arith.constant 0 : index
    %50 = vector.load %arg4[%c0_52, %c0_53, %c0_54, %c0_55] : memref<1x8x8x16xf32, #tpu.memory_space<vmem>>, vector<1x8x8x16xf32>
    %51 = vector.shape_cast %50 : vector<1x8x8x16xf32> to vector<8x8x16xf32>
    %52 = vector.shape_cast %49 : vector<8x8x16xf32> to vector<1x8x8x16xf32>
    tpu.vector_store %arg4[%c0_52, %c0_53, %c0_54, %c0_55], %52 {strides = array<i32>} : memref<1x8x8x16xf32, #tpu.memory_space<vmem>>, vector<1x8x8x16xf32>,
    return
  }
  func.func @transform_0(%arg0: i32) -> (i32, i32, i32, i32) {
    %c0_i32 = arith.constant 0 : i32
    %c0_i32_0 = arith.constant 0 : i32
    %c0_i32_1 = arith.constant 0 : i32
    %c0_i32_2 = arith.constant 0 : i32
    return %arg0, %c0_i32, %c0_i32_0, %c0_i32_1 : i32, i32, i32, i32
  }
  func.func @transform_1(%arg0: i32) -> (i32, i32) {
    %c0_i32 = arith.constant 0 : i32
    %c0_i32_0 = arith.constant 0 : i32
    %c0_i32_1 = arith.constant 0 : i32
    return %c0_i32, %c0_i32_0 : i32, i32
  }
  func.func @transform_2(%arg0: i32) -> (i32, i32) {
    %c0_i32 = arith.constant 0 : i32
    %c0_i32_0 = arith.constant 0 : i32
    %c0_i32_1 = arith.constant 0 : i32
    return %c0_i32, %c0_i32_0 : i32, i32
  }
  func.func @transform_3(%arg0: i32) -> (i32, i32, i32, i32) {
    %c0_i32 = arith.constant 0 : i32
    %c0_i32_0 = arith.constant 0 : i32
    %c0_i32_1 = arith.constant 0 : i32
    %c0_i32_2 = arith.constant 0 : i32
    return %arg0, %c0_i32, %c0_i32_0, %c0_i32_1 : i32, i32, i32, i32
  }
}

</mosaic_0001>

<bundles_post_ra>
// kernel: tpu_custom_call.1
= control target key start
LH: loop header
LB: loop body
LE: loop exit
PB: predicated region body
PF: predicated region fallthrough
CT: control target
= control target key end

     0   :  { %8 = vsyncpa [#allocation5], 0  ;;  %s2230_s0 = inlined_call_operand.vmem [shape: f32[2,32,32,3], index: 0, kind: input, shape index: {}]   ;;  %s2231_s1 = inlined_call_operand.vmem [shape: bf16[27,16], index: 1, kind: input, shape index: {}]   ;;  %s2232_s2 = inlined_call_operand.vmem [shape: f32[1,16], index: 2, kind: input, shape index: {}]   ;;  %s2233_s3 = inlined_call_operand.hbm [shape: f32[2,8,8,16], index: 3, kind: output, shape index: {}]  }
   0x1   :  { %10 = vsyncpa [#allocation5 + $0x1], 0  ;;  %s1589_s12 = smov 0   ;;  %s1591_s13 = smov 0  }
   0x2   :  { %s1593_s14 = smov 0   ;;  %s1595_s15 = smov 0  }
   0x3 LB: > { %s1610_s16 = sadd.s32 4294967295, %s1555_s15   ;;  %s1387_s17 = sadd.s32 4294967294, %s1555_s15   ;;  %s1555_s15 = sphi %s1595_s15, %s2239_s15   ;;  %s1551_s14 = sphi %s1593_s14, %s2238_s14   ;;  %s1547_s13 = sphi %s1591_s13, %s2237_s13   ;;  %s1543_s12 = sphi %s1589_s12, %s2236_s12  }
   0x4   : > { %s1614_s18 = sadd.s32 1, %s1555_s15   ;;  %s91_s19 = sadd.s32 1, %s1551_s14 }
   0x5   : > { %s88_s20 = ssub.s32 %s1555_s15, %s1614_s18  ;;  %p101_p0 = scmp.ne.s32.totalorder %s1551_s14, %s1547_s13 }
   0x6   : > { %p89_p1 = scmp.eq.s32.totalorder %s88_s20, 0  ;;  %p102_p2 = scmp.eq.s32.totalorder %s1610_s16, 1 }
   0x7   : > { %p107_p3 = scmp.ne.s32.totalorder %s1547_s13, %s1543_s12  ;;  %p108_p4 = scmp.eq.s32.totalorder %s1387_s17, 1 }
   0x8   : > { %s1625_s21 = scalar_select %p89_p1, %s1551_s14, %s91_s19  }
   0x9   : > { %p1627_p5 = por %p102_p2, %p101_p0  ;;  %p1631_p6 = por %p108_p4, %p107_p3 }
   0xa   : > { %p1390_p7 = scmp.ge.s32.totalorder %s1555_s15, 1  ;;  %p140_p8 = scmp.lt.s32.totalorder %s1555_s15, 3 }
   0xc   : > { %p141_p9 = pnand %p1390_p7, %p140_p8 }
   0xd   : > { %p164_p10 = scmp.lt.s32.totalorder (!%p141_p9), %s1610_s16, 1  ;;  %s1558_s29 = smov (!%p141_p9), 3  }
   0xe   : > { %144 = sbr.rel (%p141_p9) target bundleno = 566 (0x236), region = 32  ;;  %s1559_s30 = smov (!%p141_p9), 6  }
   0xf   : > { %s1560_s4 = smov (!%p141_p9), 9   ;;  %s1561_s5 = smov (!%p141_p9), 12  }
  0x10   : > { %s1562_s6 = smov (!%p141_p9), 15   ;;  %s1563_s7 = smov (!%p141_p9), 18  }
  0x11   : > { %s1564_s8 = smov (!%p141_p9), 21   ;;  %s1565_s9 = smov (!%p141_p9), 24  }
  0x12   : > { %s1513_s19 = scalar_lea.hbm (!%p141_p9), %s2233_s3, 128 }
  0x13   : > { %vm170_vm0 = vcmask 23552   ;;  %v1557_v0 = vmov 0.0   ;;  %s165_s24 = scalar_select %p164_p10, %s1610_s16, 1  ;;  %vm622_vm1 = vcmask 19456   ;;  %vm687_vm2 = vcmask 44056  }
  0x14   : > { %292 = vst.msk [vmem:[#allocation2 + $0x3c0] sm:$0xff] %vm170_vm0, %v1557_v0  ;;  %vm752_vm3 = vcmask 68656   ;;  %vm816_vm4 = vcmask 93256   ;;  %vm881_vm5 = vcmask 117856   ;;  %vm946_vm6 = vcmask 142456  }
  0x15   : > { %293 = vst.msk [vmem:[#allocation2 + $0x3c8] sm:$0xff] %vm170_vm0, %v1557_v0  ;;  %s1427_s25 = sshll.u32 %s165_s24, 10  ;;  %vm1011_vm7 = vcmask 167056   ;;  %vm1076_vm8 = vcmask 191656   ;;  %vm1210_vm9 = vcmask 1044480   ;;  %vm1211_vm10 = vcmask 1045504  }
  0x16   : > { %294 = vst.msk [vmem:[#allocation2 + $0x3d0] sm:$0xff] %vm170_vm0, %v1557_v0  ;;  %s1650_s28 = scalar_lea.vmem %s2230_s0, %s1427_s25  ;;  %vm1141_vm11 = vcmask 216256   ;;  %vm1197_vm12 = vcmask 220160   ;;  %s161_s25 = sand.u32 1, %s1547_s13   ;;  %vm1254_vm13 = vcmask 130048  }
  0x17   : > { %295 = vst.msk [vmem:[#allocation2 + $0x3d8] sm:$0xff] %vm170_vm0, %v1557_v0  ;;  %v434_v1 = vld [vmem:[%s1650_s28 + $0x2e0] sm:$0xff]  ;;  %v435_v2 = vld [vmem:[%s1650_s28 + $0x2e8] sm:$0xff]  ;;  %v436_v3 = vld [vmem:[%s1650_s28 + $0x2f0] sm:$0xff] }
  0x18   : > { %v437_v4 = vld [vmem:[%s1650_s28 + $0x2f8] sm:$0xff]  ;;  %563 = vst.msk [vmem:[#allocation2 + $0x3c1] sm:$0xff] %vm170_vm0, %v434_v1  ;;  %v402_v7 = vld [vmem:[%s1650_s28 + $0x1e0] sm:$0xff]  ;;  %v403_v8 = vld [vmem:[%s1650_s28 + $0x1e8] sm:$0xff] }
  0x19   : > { %564 = vst.msk [vmem:[#allocation2 + $0x3c9] sm:$0xff] %vm170_vm0, %v435_v2  ;;  %v404_v9 = vld [vmem:[%s1650_s28 + $0x1f0] sm:$0xff]  ;;  %v405_v10 = vld [vmem:[%s1650_s28 + $0x1f8] sm:$0xff]  ;;  %v450_v11 = vld [vmem:[%s1650_s28 + $0x360] sm:$0xff] }
  0x1a   : > { %565 = vst.msk [vmem:[#allocation2 + $0x3d1] sm:$0xff] %vm170_vm0, %v436_v3  ;;  %v451_v12 = vld [vmem:[%s1650_s28 + $0x368] sm:$0xff]  ;;  %v452_v13 = vld [vmem:[%s1650_s28 + $0x370] sm:$0xff]  ;;  %v453_v14 = vld [vmem:[%s1650_s28 + $0x378] sm:$0xff] }
  0x1b   : > { %566 = vst.msk [vmem:[#allocation2 + $0x3d9] sm:$0xff] %vm170_vm0, %v437_v4  ;;  %v418_v15 = vld [vmem:[%s1650_s28 + $0x260] sm:$0xff]  ;;  %v419_v16 = vld [vmem:[%s1650_s28 + $0x268] sm:$0xff]  ;;  %v420_v17 = vld [vmem:[%s1650_s28 + $0x270] sm:$0xff] }
  0x1c   : > { %171 = vst.msk [vmem:[#allocation2] sm:$0xff] %vm170_vm0, %v1557_v0  ;;  %v421_v18 = vld [vmem:[%s1650_s28 + $0x278] sm:$0xff]  ;;  %v438_v19 = vld [vmem:[%s1650_s28 + $0x300] sm:$0xff]  ;;  %v439_v21 = vld [vmem:[%s1650_s28 + $0x308] sm:$0xff] }
  0x1d   : > { %172 = vst.msk [vmem:[#allocation2 + $0x8] sm:$0xff] %vm170_vm0, %v1557_v0  ;;  %v440_v24 = vld [vmem:[%s1650_s28 + $0x310] sm:$0xff]  ;;  %v441_v26 = vld [vmem:[%s1650_s28 + $0x318] sm:$0xff]  ;;  %v422_v27 = vld [vmem:[%s1650_s28 + $0x280] sm:$0xff] }
  0x1e   : > { %173 = vst.msk [vmem:[#allocation2 + $0x10] sm:$0xff] %vm170_vm0, %v1557_v0  ;;  %v423_v29 = vld [vmem:[%s1650_s28 + $0x288] sm:$0xff]  ;;  %v424_v31 = vld [vmem:[%s1650_s28 + $0x290] sm:$0xff]  ;;  %v425_v32 = vld [vmem:[%s1650_s28 + $0x298] sm:$0xff] }
  0x1f   : > { %174 = vst.msk [vmem:[#allocation2 + $0x18] sm:$0xff] %vm170_vm0, %v1557_v0  ;;  %v406_v34 = vld [vmem:[%s1650_s28 + $0x200] sm:$0xff]  ;;  %v407_v36 = vld [vmem:[%s1650_s28 + $0x208] sm:$0xff]  ;;  %v408_v39 = vld [vmem:[%s1650_s28 + $0x210] sm:$0xff] }
  0x20   : > { %177 = vst.msk [vmem:[#allocation2 + $0x28] sm:$0xff] %vm170_vm0, %v1557_v0  ;;  %v409_v41 = vld [vmem:[%s1650_s28 + $0x218] sm:$0xff]  ;;  %v454_v43 = vld [vmem:[%s1650_s28 + $0x380] sm:$0xff]  ;;  %v455_v45 = vld [vmem:[%s1650_s28 + $0x388] sm:$0xff] }
  0x21   : > { %178 = vst.msk [vmem:[#allocation2 + $0x30] sm:$0xff] %vm170_vm0, %v1557_v0  ;;  %v456_v46 = vld [vmem:[%s1650_s28 + $0x390] sm:$0xff]  ;;  %v457_v47 = vld [vmem:[%s1650_s28 + $0x398] sm:$0xff]  ;;  %v442_v50 = vld [vmem:[%s1650_s28 + $0x320] sm:$0xff] }
  0x22   : > { %v644_v5 = vld [vmem:[#allocation2 + $0x3c1] ss:$4 sm:$0xff]  ;;  %179 = vst.msk [vmem:[#allocation2 + $0x38] sm:$0xff] %vm170_vm0, %v1557_v0  ;;  %v709_v44 = vld [vmem:[#allocation2 + $0x3c2] ss:$4 sm:$0xff] }
  0x23   : > { %v653_v6 = vpack.c.bf16 %v644_v5, %v644_v5  ;;  %180 = vst.msk [vmem:[#allocation2 + $0x40] sm:$0xff] %vm170_vm0, %v1557_v0  ;;  %v718_v48 = vpack.c.bf16 %v709_v44, %v709_v44  ;;  %v443_v51 = vld [vmem:[%s1650_s28 + $0x328] sm:$0xff]  ;;  %v444_v52 = vld [vmem:[%s1650_s28 + $0x330] sm:$0xff]  ;;  %v445_v54 = vld [vmem:[%s1650_s28 + $0x338] sm:$0xff] }
  0x24   : > { %182 = vst.msk [vmem:[#allocation2 + $0x50] sm:$0xff] %vm170_vm0, %v1557_v0  ;;  %v426_v57 = vld [vmem:[%s1650_s28 + $0x2a0] sm:$0xff]  ;;  %v427_v59 = vld [vmem:[%s1650_s28 + $0x2a8] sm:$0xff]  ;;  %v428_v61 = vld [vmem:[%s1650_s28 + $0x2b0] sm:$0xff] }
  0x25   : > { %675 = vrot.lane.b32.xlu1 %v653_v6, %s1558_s29  ;;  %183 = vst.msk [vmem:[#allocation2 + $0x58] sm:$0xff] %vm170_vm0, %v1557_v0  ;;  %v354_v1 = vld [vmem:[%s1650_s28 + $0x60] sm:$0xff]  ;;  %v355_v2 = vld [vmem:[%s1650_s28 + $0x68] sm:$0xff]  ;;  %v356_v5 = vld [vmem:[%s1650_s28 + $0x70] sm:$0xff] }
  0x26   : > { %184 = vst.msk [vmem:[#allocation2 + $0x60] sm:$0xff] %vm170_vm0, %v1557_v0 }
  0x27   : > { %185 = vst.msk [vmem:[#allocation2 + $0x68] sm:$0xff] %vm170_vm0, %v1557_v0 }
  0x28   : > { %192 = vst.msk [vmem:[#allocation2 + $0xa0] sm:$0xff] %vm170_vm0, %v1557_v0 }
  0x29   : > { %193 = vst.msk [vmem:[#allocation2 + $0xa8] sm:$0xff] %vm170_vm0, %v1557_v0 }
  0x2a   : > { %194 = vst.msk [vmem:[#allocation2 + $0xb0] sm:$0xff] %vm170_vm0, %v1557_v0 }
  0x2b   : > { %195 = vst.msk [vmem:[#allocation2 + $0xb8] sm:$0xff] %vm170_vm0, %v1557_v0 }
  0x2c   : > { %197 = vst.msk [vmem:[#allocation2 + $0xc8] sm:$0xff] %vm170_vm0, %v1557_v0 }
  0x2d   : > { %198 = vst.msk [vmem:[#allocation2 + $0xd0] sm:$0xff] %vm170_vm0, %v1557_v0 }
  0x2e   : > { %199 = vst.msk [vmem:[#allocation2 + $0xd8] sm:$0xff] %vm170_vm0, %v1557_v0 }
  0x2f   : > { %200 = vst.msk [vmem:[#allocation2 + $0xe0] sm:$0xff] %vm170_vm0, %v1557_v0 }
  0x30   : > { %202 = vst.msk [vmem:[#allocation2 + $0xf0] sm:$0xff] %vm170_vm0, %v1557_v0 }
  0x31   : > { %203 = vst.msk [vmem:[#allocation2 + $0xf8] sm:$0xff] %vm170_vm0, %v1557_v0 }
  0x32   : > { %204 = vst.msk [vmem:[#allocation2 + $0x100] sm:$0xff] %vm170_vm0, %v1557_v0 }
  0x33   : > { %205 = vst.msk [vmem:[#allocation2 + $0x108] sm:$0xff] %vm170_vm0, %v1557_v0 }
  0x34   : > { %212 = vst.msk [vmem:[#allocation2 + $0x140] sm:$0xff] %vm170_vm0, %v1557_v0 }
  0x35   : > { %213 = vst.msk [vmem:[#allocation2 + $0x148] sm:$0xff] %vm170_vm0, %v1557_v0 }
  0x36   : > { %214 = vst.msk [vmem:[#allocation2 + $0x150] sm:$0xff] %vm170_vm0, %v1557_v0 }
  0x37   : > { %215 = vst.msk [vmem:[#allocation2 + $0x158] sm:$0xff] %vm170_vm0, %v1557_v0 }
  0x38   : > { %217 = vst.msk [vmem:[#allocation2 + $0x168] sm:$0xff] %vm170_vm0, %v1557_v0 }
  0x39   : > { %218 = vst.msk [vmem:[#allocation2 + $0x170] sm:$0xff] %vm170_vm0, %v1557_v0 }
  0x3a   : > { %219 = vst.msk [vmem:[#allocation2 + $0x178] sm:$0xff] %vm170_vm0, %v1557_v0 }
  0x3b   : > { %220 = vst.msk [vmem:[#allocation2 + $0x180] sm:$0xff] %vm170_vm0, %v1557_v0 }
  0x3c   : > { %222 = vst.msk [vmem:[#allocation2 + $0x190] sm:$0xff] %vm170_vm0, %v1557_v0 }
  0x3d   : > { %223 = vst.msk [vmem:[#allocation2 + $0x198] sm:$0xff] %vm170_vm0, %v1557_v0 }
  0x3e   : > { %224 = vst.msk [vmem:[#allocation2 + $0x1a0] sm:$0xff] %vm170_vm0, %v1557_v0 }
  0x3f   : > { %225 = vst.msk [vmem:[#allocation2 + $0x1a8] sm:$0xff] %vm170_vm0, %v1557_v0 }
  0x40   : > { %232 = vst.msk [vmem:[#allocation2 + $0x1e0] sm:$0xff] %vm170_vm0, %v1557_v0 }
  0x41   : > { %233 = vst.msk [vmem:[#allocation2 + $0x1e8] sm:$0xff] %vm170_vm0, %v1557_v0 }
  0x42   : > { %234 = vst.msk [vmem:[#allocation2 + $0x1f0] sm:$0xff] %vm170_vm0, %v1557_v0 }
  0x43   : > { %235 = vst.msk [vmem:[#allocation2 + $0x1f8] sm:$0xff] %vm170_vm0, %v1557_v0 }
  0x44   : > { %237 = vst.msk [vmem:[#allocation2 + $0x208] sm:$0xff] %vm170_vm0, %v1557_v0 }
  0x45   : > { %238 = vst.msk [vmem:[#allocation2 + $0x210] sm:$0xff] %vm170_vm0, %v1557_v0 }
  0x46   : > { %239 = vst.msk [vmem:[#allocation2 + $0x218] sm:$0xff] %vm170_vm0, %v1557_v0 }
  0x47   : > { %240 = vst.msk [vmem:[#allocation2 + $0x220] sm:$0xff] %vm170_vm0, %v1557_v0 }
  0x48   : > { %242 = vst.msk [vmem:[#allocation2 + $0x230] sm:$0xff] %vm170_vm0, %v1557_v0 }
  0x49   : > { %243 = vst.msk [vmem:[#allocation2 + $0x238] sm:$0xff] %vm170_vm0, %v1557_v0 }
  0x4a   : > { %244 = vst.msk [vmem:[#allocation2 + $0x240] sm:$0xff] %vm170_vm0, %v1557_v0 }
  0x4b   : > { %245 = vst.msk [vmem:[#allocation2 + $0x248] sm:$0xff] %vm170_vm0, %v1557_v0 }
  0x4c   : > { %252 = vst.msk [vmem:[#allocation2 + $0x280] sm:$0xff] %vm170_vm0, %v1557_v0 }
  0x4d   : > { %253 = vst.msk [vmem:[#allocation2 + $0x288] sm:$0xff] %vm170_vm0, %v1557_v0 }
  0x4e   : > { %254 = vst.msk [vmem:[#allocation2 + $0x290] sm:$0xff] %vm170_vm0, %v1557_v0 }
  0x4f   : > { %255 = vst.msk [vmem:[#allocation2 + $0x298] sm:$0xff] %vm170_vm0, %v1557_v0 }
  0x50   : > { %257 = vst.msk [vmem:[#allocation2 + $0x2a8] sm:$0xff] %vm170_vm0, %v1557_v0 }
  0x51   : > { %258 = vst.msk [vmem:[#allocation2 + $0x2b0] sm:$0xff] %vm170_vm0, %v1557_v0 }
  0x52   : > { %259 = vst.msk [vmem:[#allocation2 + $0x2b8] sm:$0xff] %vm170_vm0, %v1557_v0 }
  0x53   : > { %260 = vst.msk [vmem:[#allocation2 + $0x2c0] sm:$0xff] %vm170_vm0, %v1557_v0 }
  0x54   : > { %262 = vst.msk [vmem:[#allocation2 + $0x2d0] sm:$0xff] %vm170_vm0, %v1557_v0 }
  0x55   : > { %263 = vst.msk [vmem:[#allocation2 + $0x2d8] sm:$0xff] %vm170_vm0, %v1557_v0 }
  0x56   : > { %264 = vst.msk [vmem:[#allocation2 + $0x2e0] sm:$0xff] %vm170_vm0, %v1557_v0 }
  0x57   : > { %265 = vst.msk [vmem:[#allocation2 + $0x2e8] sm:$0xff] %vm170_vm0, %v1557_v0 }
  0x58   : > { %272 = vst.msk [vmem:[#allocation2 + $0x320] sm:$0xff] %vm170_vm0, %v1557_v0 }
  0x59   : > { %273 = vst.msk [vmem:[#allocation2 + $0x328] sm:$0xff] %vm170_vm0, %v1557_v0 }
  0x5a   : > { %274 = vst.msk [vmem:[#allocation2 + $0x330] sm:$0xff] %vm170_vm0, %v1557_v0 }
  0x5b   : > { %275 = vst.msk [vmem:[#allocation2 + $0x338] sm:$0xff] %vm170_vm0, %v1557_v0 }
  0x5c   : > { %277 = vst.msk [vmem:[#allocation2 + $0x348] sm:$0xff] %vm170_vm0, %v1557_v0 }
  0x5d   : > { %278 = vst.msk [vmem:[#allocation2 + $0x350] sm:$0xff] %vm170_vm0, %v1557_v0 }
  0x5e   : > { %279 = vst.msk [vmem:[#allocation2 + $0x358] sm:$0xff] %vm170_vm0, %v1557_v0 }
  0x5f   : > { %280 = vst.msk [vmem:[#allocation2 + $0x360] sm:$0xff] %vm170_vm0, %v1557_v0 }
  0x60   : > { %282 = vst.msk [vmem:[#allocation2 + $0x370] sm:$0xff] %vm170_vm0, %v1557_v0 }
  0x61   : > { %283 = vst.msk [vmem:[#allocation2 + $0x378] sm:$0xff] %vm170_vm0, %v1557_v0 }
  0x62   : > { %284 = vst.msk [vmem:[#allocation2 + $0x380] sm:$0xff] %vm170_vm0, %v1557_v0 }
  0x63   : > { %285 = vst.msk [vmem:[#allocation2 + $0x388] sm:$0xff] %vm170_vm0, %v1557_v0 }
  0x64   : > { %297 = vst.msk [vmem:[#allocation2 + $0x3e8] sm:$0xff] %vm170_vm0, %v1557_v0 }
  0x65   : > { %298 = vst.msk [vmem:[#allocation2 + $0x3f0] sm:$0xff] %vm170_vm0, %v1557_v0 }
  0x66   : > { %299 = vst.msk [vmem:[#allocation2 + $0x3f8] sm:$0xff] %vm170_vm0, %v1557_v0 }
  0x67   : > { %300 = vst.msk [vmem:[#allocation2 + $0x400] sm:$0xff] %vm170_vm0, %v1557_v0 }
  0x68   : > { %302 = vst.msk [vmem:[#allocation2 + $0x410] sm:$0xff] %vm170_vm0, %v1557_v0 }
  0x69   : > { %303 = vst.msk [vmem:[#allocation2 + $0x418] sm:$0xff] %vm170_vm0, %v1557_v0 }
  0x6a   : > { %304 = vst.msk [vmem:[#allocation2 + $0x420] sm:$0xff] %vm170_vm0, %v1557_v0 }
  0x6b   : > { %305 = vst.msk [vmem:[#allocation2 + $0x428] sm:$0xff] %vm170_vm0, %v1557_v0 }
  0x6c   : > { %312 = vst.msk [vmem:[#allocation2 + $0x460] sm:$0xff] %vm170_vm0, %v1557_v0 }
  0x6d   : > { %313 = vst.msk [vmem:[#allocation2 + $0x468] sm:$0xff] %vm170_vm0, %v1557_v0 }
  0x6e   : > { %314 = vst.msk [vmem:[#allocation2 + $0x470] sm:$0xff] %vm170_vm0, %v1557_v0 }
  0x6f   : > { %315 = vst.msk [vmem:[#allocation2 + $0x478] sm:$0xff] %vm170_vm0, %v1557_v0 }
  0x70   : > { %317 = vst.msk [vmem:[#allocation2 + $0x488] sm:$0xff] %vm170_vm0, %v1557_v0 }
  0x71   : > { %318 = vst.msk [vmem:[#allocation2 + $0x490] sm:$0xff] %vm170_vm0, %v1557_v0 }
  0x72   : > { %319 = vst.msk [vmem:[#allocation2 + $0x498] sm:$0xff] %vm170_vm0, %v1557_v0 }
  0x73   : > { %320 = vst.msk [vmem:[#allocation2 + $0x4a0] sm:$0xff] %vm170_vm0, %v1557_v0 }
  0x74   : > { %322 = vst.msk [vmem:[#allocation2 + $0x4b0] sm:$0xff] %vm170_vm0, %v1557_v0 }
  0x75   : > { %323 = vst.msk [vmem:[#allocation2 + $0x4b8] sm:$0xff] %vm170_vm0, %v1557_v0 }
  0x76   : > { %324 = vst.msk [vmem:[#allocation2 + $0x4c0] sm:$0xff] %vm170_vm0, %v1557_v0 }
  0x77   : > { %325 = vst.msk [vmem:[#allocation2 + $0x4c8] sm:$0xff] %vm170_vm0, %v1557_v0  ;;  %v429_v0 = vld [vmem:[%s1650_s28 + $0x2b8] sm:$0xff] }
  0x78   : > { %531 = vst.msk [vmem:[#allocation2 + $0x281] sm:$0xff] %vm170_vm0, %v402_v7  ;;  %v357_v7 = vld [vmem:[%s1650_s28 + $0x78] sm:$0xff] }
  0x79   : > { %532 = vst.msk [vmem:[#allocation2 + $0x289] sm:$0xff] %vm170_vm0, %v403_v8 }
  0x7a   : > { %533 = vst.msk [vmem:[#allocation2 + $0x291] sm:$0xff] %vm170_vm0, %v404_v9 }
  0x7b   : > { %534 = vst.msk [vmem:[#allocation2 + $0x299] sm:$0xff] %vm170_vm0, %v405_v10 }
  0x7c   : > { %579 = vst.msk [vmem:[#allocation2 + $0x461] sm:$0xff] %vm170_vm0, %v450_v11  ;;  %v386_v11 = vld [vmem:[%s1650_s28 + $0x160] sm:$0xff] }
  0x7d   : > { %580 = vst.msk [vmem:[#allocation2 + $0x469] sm:$0xff] %vm170_vm0, %v451_v12  ;;  %v387_v12 = vld [vmem:[%s1650_s28 + $0x168] sm:$0xff] }
  0x7e   : > { %581 = vst.msk [vmem:[#allocation2 + $0x471] sm:$0xff] %vm170_vm0, %v452_v13  ;;  %v388_v13 = vld [vmem:[%s1650_s28 + $0x170] sm:$0xff] }
  0x7f   : > { %582 = vst.msk [vmem:[#allocation2 + $0x479] sm:$0xff] %vm170_vm0, %v453_v14  ;;  %v389_v14 = vld [vmem:[%s1650_s28 + $0x178] sm:$0xff] }
  0x80   : > { %547 = vst.msk [vmem:[#allocation2 + $0x321] sm:$0xff] %vm170_vm0, %v418_v15  ;;  %v410_v15 = vld [vmem:[%s1650_s28 + $0x220] sm:$0xff] }
  0x81   : > { %548 = vst.msk [vmem:[#allocation2 + $0x329] sm:$0xff] %vm170_vm0, %v419_v16 }
  0x82   : > { %v640_v20 = vld [vmem:[#allocation2 + $0x281] ss:$4 sm:$0xff]  ;;  %549 = vst.msk [vmem:[#allocation2 + $0x331] sm:$0xff] %vm170_vm0, %v420_v17  ;;  %v705_v22 = vld [vmem:[#allocation2 + $0x282] ss:$4 sm:$0xff] }
  0x83   : > { %v651_v23 = vpack.c.bf16 %v640_v20, %v640_v20  ;;  %550 = vst.msk [vmem:[#allocation2 + $0x339] sm:$0xff] %vm170_vm0, %v421_v18  ;;  %v716_v25 = vpack.c.bf16 %v705_v22, %v705_v22  ;;  %v411_v18 = vld [vmem:[%s1650_s28 + $0x228] sm:$0xff]  ;;  %v412_v20 = vld [vmem:[%s1650_s28 + $0x230] sm:$0xff] }
  0x84   : > { %567 = vst.msk [vmem:[#allocation2 + $0x3e9] sm:$0xff] %vm170_vm0, %v438_v19 }
  0x85   : > { %671 = vrot.lane.b32.xlu0 %v651_v23, %s1558_s29  ;;  %568 = vst.msk [vmem:[#allocation2 + $0x3f1] sm:$0xff] %vm170_vm0, %v439_v21  ;;  %736 = vrot.lane.b32.xlu2 %v716_v25, %s1559_s30  ;;  %v413_v21 = vld [vmem:[%s1650_s28 + $0x238] sm:$0xff]  ;;  %v458_v25 = vld [vmem:[%s1650_s28 + $0x3a0] sm:$0xff] }
  0x86   : > { %v646_v28 = vld [vmem:[#allocation2 + $0x461] ss:$4 sm:$0xff]  ;;  %569 = vst.msk [vmem:[#allocation2 + $0x3f9] sm:$0xff] %vm170_vm0, %v440_v24  ;;  %v711_v33 = vld [vmem:[#allocation2 + $0x462] ss:$4 sm:$0xff] }
  0x87   : > { %v654_v30 = vpack.c.bf16 %v646_v28, %v646_v28  ;;  %570 = vst.msk [vmem:[#allocation2 + $0x401] sm:$0xff] %vm170_vm0, %v441_v26  ;;  %v719_v42 = vpack.c.bf16 %v711_v33, %v711_v33  ;;  %v459_v26 = vld [vmem:[%s1650_s28 + $0x3a8] sm:$0xff]  ;;  %v461_v28 = vld [vmem:[%s1650_s28 + $0x3b8] sm:$0xff] }
  0x88   : > { %551 = vst.msk [vmem:[#allocation2 + $0x349] sm:$0xff] %vm170_vm0, %v422_v27  ;;  %v460_v27 = vld [vmem:[%s1650_s28 + $0x3b0] sm:$0xff] }
  0x89   : > { %677 = vrot.lane.b32.xlu1 %v654_v30, %s1558_s29  ;;  %552 = vst.msk [vmem:[#allocation2 + $0x351] sm:$0xff] %vm170_vm0, %v423_v29 }
  0x8a   : > { %v642_v35 = vld [vmem:[#allocation2 + $0x321] ss:$4 sm:$0xff]  ;;  %553 = vst.msk [vmem:[#allocation2 + $0x359] sm:$0xff] %vm170_vm0, %v424_v31  ;;  %v707_v37 = vld [vmem:[#allocation2 + $0x322] ss:$4 sm:$0xff] }
  0x8b   : > { %v652_v38 = vpack.c.bf16 %v642_v35, %v642_v35  ;;  %554 = vst.msk [vmem:[#allocation2 + $0x361] sm:$0xff] %vm170_vm0, %v425_v32  ;;  %v717_v40 = vpack.c.bf16 %v707_v37, %v707_v37  ;;  %v370_v35 = vld [vmem:[%s1650_s28 + $0xe0] sm:$0xff]  ;;  %v372_v37 = vld [vmem:[%s1650_s28 + $0xf0] sm:$0xff] }
  0x8c   : > { %535 = vst.msk [vmem:[#allocation2 + $0x2a9] sm:$0xff] %vm170_vm0, %v406_v34 }
  0x8d   : > { %673 = vrot.lane.b32.xlu0 %v652_v38, %s1558_s29  ;;  %536 = vst.msk [vmem:[#allocation2 + $0x2b1] sm:$0xff] %vm170_vm0, %v407_v36  ;;  %738 = vrot.lane.b32.xlu2 %v717_v40, %s1559_s30  ;;  %v371_v36 = vld [vmem:[%s1650_s28 + $0xe8] sm:$0xff]  ;;  %v373_v38 = vld [vmem:[%s1650_s28 + $0xf8] sm:$0xff] }
  0x8e   : > { %537 = vst.msk [vmem:[#allocation2 + $0x2b9] sm:$0xff] %vm170_vm0, %v408_v39  ;;  %v773_v49 = vld [vmem:[#allocation2 + $0x3e8] ss:$4 sm:$0xff]  ;;  %v838_v10 = vld [vmem:[#allocation2 + $0x3e9] ss:$4 sm:$0xff] }
  0x8f   : > { %538 = vst.msk [vmem:[#allocation2 + $0x2c1] sm:$0xff] %vm170_vm0, %v409_v41  ;;  %v782_v53 = vpack.c.bf16 %v773_v49, %v773_v49  ;;  %v847_v17 = vpack.c.bf16 %v838_v10, %v838_v10  ;;  %v903_v31 = vld [vmem:[#allocation2 + $0x3ea] ss:$4 sm:$0xff] }
  0x90   : > { %583 = vst.msk [vmem:[#allocation2 + $0x489] sm:$0xff] %vm170_vm0, %v454_v43  ;;  %v912_v32 = vpack.c.bf16 %v903_v31, %v903_v31  ;;  %v697_v10 = vld [vmem:[#allocation2 + $0x2] ss:$4 sm:$0xff] }
  0x91   : > { %742 = vrot.lane.b32.xlu1 %v719_v42, %s1559_s30  ;;  %584 = vst.msk [vmem:[#allocation2 + $0x491] sm:$0xff] %vm170_vm0, %v455_v45 }
  0x92   : > { %585 = vst.msk [vmem:[#allocation2 + $0x499] sm:$0xff] %vm170_vm0, %v456_v46  ;;  %v771_v55 = vld [vmem:[#allocation2 + $0x348] ss:$4 sm:$0xff]  ;;  %v836_v62 = vld [vmem:[#allocation2 + $0x349] ss:$4 sm:$0xff] }
  0x93   : > { %586 = vst.msk [vmem:[#allocation2 + $0x4a1] sm:$0xff] %vm170_vm0, %v457_v47  ;;  %v781_v60 = vpack.c.bf16 %v771_v55, %v771_v55  ;;  %v846_v3 = vpack.c.bf16 %v836_v62, %v836_v62  ;;  %v901_v24 = vld [vmem:[#allocation2 + $0x34a] ss:$4 sm:$0xff]  ;;  %v632_v47 = vld [vmem:[#allocation2 + $0x1] ss:$4 sm:$0xff] }
  0x94   : > { %571 = vst.msk [vmem:[#allocation2 + $0x411] sm:$0xff] %vm170_vm0, %v442_v50  ;;  %v911_v30 = vpack.c.bf16 %v901_v24, %v901_v24  ;;  %v375_v62 = vld [vmem:[%s1650_s28 + $0x108] sm:$0xff] }
  0x95   : > { %740 = vrot.lane.b32.xlu0 %v718_v48, %s1559_s30  ;;  %572 = vst.msk [vmem:[#allocation2 + $0x419] sm:$0xff] %vm170_vm0, %v443_v51  ;;  %v647_v48 = vpack.c.bf16 %v632_v47, %v632_v47  ;;  %v342_v51 = vld [vmem:[%s1650_s28] sm:$0xff] }
  0x96   : > { %v769_v56 = vld [vmem:[#allocation2 + $0x2a8] ss:$4 sm:$0xff]  ;;  %573 = vst.msk [vmem:[#allocation2 + $0x421] sm:$0xff] %vm170_vm0, %v444_v52  ;;  %v834_v6 = vld [vmem:[#allocation2 + $0x2a9] ss:$4 sm:$0xff] }
  0x97   : > { %v780_v58 = vpack.c.bf16 %v769_v56, %v769_v56  ;;  %574 = vst.msk [vmem:[#allocation2 + $0x429] sm:$0xff] %vm170_vm0, %v445_v54  ;;  %v845_v8 = vpack.c.bf16 %v834_v6, %v834_v6  ;;  %v899_v9 = vld [vmem:[#allocation2 + $0x2aa] ss:$4 sm:$0xff] }
  0x98   : > { %555 = vst.msk [vmem:[#allocation2 + $0x371] sm:$0xff] %vm170_vm0, %v426_v57  ;;  %v910_v16 = vpack.c.bf16 %v899_v9, %v899_v9  ;;  %v343_v52 = vld [vmem:[%s1650_s28 + $0x8] sm:$0xff]  ;;  %v345_v54 = vld [vmem:[%s1650_s28 + $0x18] sm:$0xff]  ;;  %v392_v6 = vld [vmem:[%s1650_s28 + $0x190] sm:$0xff] }
  0x99   : > { %804 = vrot.lane.b32.xlu1 %v782_v53, %s1560_s4  ;;  %800 = vrot.lane.b32.xlu2 %v780_v58, %s1560_s4  ;;  %556 = vst.msk [vmem:[#allocation2 + $0x379] sm:$0xff] %vm170_vm0, %v427_v59  ;;  %v344_v53 = vld [vmem:[%s1650_s28 + $0x10] sm:$0xff] }
  0x9a   : > { %v775_v63 = vld [vmem:[#allocation2 + $0x488] ss:$4 sm:$0xff]  ;;  %557 = vst.msk [vmem:[#allocation2 + $0x381] sm:$0xff] %vm170_vm0, %v428_v61  ;;  %v840_v19 = vld [vmem:[#allocation2 + $0x489] ss:$4 sm:$0xff] }
  0x9b   : > { %v783_v4 = vpack.c.bf16 %v775_v63, %v775_v63  ;;  %558 = vst.msk [vmem:[#allocation2 + $0x389] sm:$0xff] %vm170_vm0, %v429_v0  ;;  %v848_v22 = vpack.c.bf16 %v840_v19, %v840_v19  ;;  %v905_v23 = vld [vmem:[#allocation2 + $0x48a] ss:$4 sm:$0xff] }
  0x9c   : > { %483 = vst.msk [vmem:[#allocation2 + $0xa1] sm:$0xff] %vm170_vm0, %v354_v1  ;;  %v913_v29 = vpack.c.bf16 %v905_v23, %v905_v23  ;;  %v374_v61 = vld [vmem:[%s1650_s28 + $0x100] sm:$0xff]  ;;  %v376_v63 = vld [vmem:[%s1650_s28 + $0x110] sm:$0xff]  ;;  %v377_v0 = vld [vmem:[%s1650_s28 + $0x118] sm:$0xff] }
  0x9d   : > { %802 = vrot.lane.b32.xlu0 %v781_v60, %s1560_s4  ;;  %484 = vst.msk [vmem:[#allocation2 + $0xa9] sm:$0xff] %vm170_vm0, %v355_v2  ;;  %v390_v1 = vld [vmem:[%s1650_s28 + $0x180] sm:$0xff] }
  0x9e   : > { %485 = vst.msk [vmem:[#allocation2 + $0xb1] sm:$0xff] %vm170_vm0, %v356_v5  ;;  %v968_v33 = vld [vmem:[#allocation2 + $0x410] ss:$4 sm:$0xff]  ;;  %v1033_v5 = vld [vmem:[#allocation2 + $0x411] ss:$4 sm:$0xff] }
  0x9f   : > { %486 = vst.msk [vmem:[#allocation2 + $0xb9] sm:$0xff] %vm170_vm0, %v357_v7  ;;  %v977_v39 = vpack.c.bf16 %v968_v33, %v968_v33  ;;  %v393_v7 = vld [vmem:[%s1650_s28 + $0x198] sm:$0xff] }
  0xa0   : > { %515 = vst.msk [vmem:[#allocation2 + $0x1e1] sm:$0xff] %vm170_vm0, %v386_v11  ;;  %v358_v11 = vld [vmem:[%s1650_s28 + $0x80] sm:$0xff] }
  0xa1   : > { %867 = vrot.lane.b32.xlu1 %v846_v3, %s1561_s5  ;;  %806 = vrot.lane.b32.xlu2 %v783_v4, %s1560_s4  ;;  %516 = vst.msk [vmem:[#allocation2 + $0x1e9] sm:$0xff] %vm170_vm0, %v387_v12  ;;  %v391_v4 = vld [vmem:[%s1650_s28 + $0x188] sm:$0xff] }
  0xa2   : > { %517 = vst.msk [vmem:[#allocation2 + $0x1f1] sm:$0xff] %vm170_vm0, %v388_v13  ;;  %v966_v41 = vld [vmem:[#allocation2 + $0x370] ss:$4 sm:$0xff]  ;;  %v1031_v60 = vld [vmem:[#allocation2 + $0x371] ss:$4 sm:$0xff] }
  0xa3   : > { %518 = vst.msk [vmem:[#allocation2 + $0x1f9] sm:$0xff] %vm170_vm0, %v389_v14  ;;  %v976_v42 = vpack.c.bf16 %v966_v41, %v966_v41  ;;  %v1041_v3 = vpack.c.bf16 %v1031_v60, %v1031_v60  ;;  %v359_v12 = vld [vmem:[%s1650_s28 + $0x88] sm:$0xff]  ;;  %v360_v13 = vld [vmem:[%s1650_s28 + $0x90] sm:$0xff] }
  0xa4   : > { %539 = vst.msk [vmem:[#allocation2 + $0x2d1] sm:$0xff] %vm170_vm0, %v410_v15  ;;  %v607_v14 = vld [vmem:[#allocation2 + $0x280] ss:$4 sm:$0xff]  ;;  %v1096_v24 = vld [vmem:[#allocation2 + $0x372] ss:$4 sm:$0xff] }
  0xa5   : > { %865 = vrot.lane.b32.xlu0 %v845_v8, %s1561_s5  ;;  %540 = vst.msk [vmem:[#allocation2 + $0x2d9] sm:$0xff] %vm170_vm0, %v411_v18  ;;  %v1042_v8 = vpack.c.bf16 %v1033_v5, %v1033_v5  ;;  %v618_v18 = vpack.c.bf16 %v607_v14, %v607_v14 }
  0xa6   : > { %541 = vst.msk [vmem:[#allocation2 + $0x2e1] sm:$0xff] %vm170_vm0, %v412_v20  ;;  %v634_v43 = vld [vmem:[#allocation2 + $0xa1] ss:$4 sm:$0xff]  ;;  %v699_v19 = vld [vmem:[#allocation2 + $0xa2] ss:$4 sm:$0xff] }
  0xa7   : > { %542 = vst.msk [vmem:[#allocation2 + $0x2e9] sm:$0xff] %vm170_vm0, %v413_v21  ;;  %v648_v45 = vpack.c.bf16 %v634_v43, %v634_v43  ;;  %v361_v21 = vld [vmem:[%s1650_s28 + $0x98] sm:$0xff]  ;;  %v713_v23 = vpack.c.bf16 %v699_v19, %v699_v19 }
  0xa8   : > { %587 = vst.msk [vmem:[#allocation2 + $0x4b1] sm:$0xff] %vm170_vm0, %v458_v25 }
  0xa9   : > { %930 = vrot.lane.b32.xlu1 %v910_v16, %s1562_s6  ;;  %869 = vrot.lane.b32.xlu2 %v847_v17, %s1561_s5  ;;  %588 = vst.msk [vmem:[#allocation2 + $0x4b9] sm:$0xff] %vm170_vm0, %v459_v26  ;;  %v712_v16 = vpack.c.bf16 %v697_v10, %v697_v10  ;;  %v611_v17 = vld [vmem:[#allocation2 + $0x3c0] ss:$4 sm:$0xff] }
  0xaa   : > { %589 = vst.msk [vmem:[#allocation2 + $0x4c1] sm:$0xff] %vm170_vm0, %v460_v27  ;;  %v638_v57 = vld [vmem:[#allocation2 + $0x1e1] ss:$4 sm:$0xff]  ;;  %v620_v20 = vpack.c.bf16 %v611_v17, %v611_v17  ;;  %v703_v25 = vld [vmem:[#allocation2 + $0x1e2] ss:$4 sm:$0xff]  ;;  %v1106_v27 = vpack.c.bf16 %v1096_v24, %v1096_v24 }
  0xab   : > { %590 = vst.msk [vmem:[#allocation2 + $0x4c9] sm:$0xff] %vm170_vm0, %v461_v28  ;;  %v650_v58 = vpack.c.bf16 %v638_v57, %v638_v57  ;;  %v609_v26 = vld [vmem:[#allocation2 + $0x320] ss:$4 sm:$0xff]  ;;  %v715_v28 = vpack.c.bf16 %v703_v25, %v703_v25 }
  0xac   : > { %499 = vst.msk [vmem:[#allocation2 + $0x141] sm:$0xff] %vm170_vm0, %v370_v35  ;;  %v396_v57 = vld [vmem:[%s1650_s28 + $0x1b0] sm:$0xff] }
  0xad   : > { %871 = vrot.lane.b32.xlu0 %v848_v22, %s1561_s5  ;;  %500 = vst.msk [vmem:[#allocation2 + $0x149] sm:$0xff] %vm170_vm0, %v371_v36  ;;  %v676_v22 = vpop.permute.xlu1 %675  ;;  %v1098_v36 = vld [vmem:[#allocation2 + $0x412] ss:$4 sm:$0xff] }
  0xae   : > { %v964_v34 = vld [vmem:[#allocation2 + $0x2d0] ss:$4 sm:$0xff]  ;;  %501 = vst.msk [vmem:[#allocation2 + $0x151] sm:$0xff] %vm170_vm0, %v372_v37  ;;  %v1029_v49 = vld [vmem:[#allocation2 + $0x2d1] ss:$4 sm:$0xff] }
  0xaf   : > { %v975_v40 = vpack.c.bf16 %v964_v34, %v964_v34  ;;  %502 = vst.msk [vmem:[#allocation2 + $0x159] sm:$0xff] %vm170_vm0, %v373_v38  ;;  %v1040_v55 = vpack.c.bf16 %v1029_v49, %v1029_v49  ;;  %v1094_v31 = vld [vmem:[#allocation2 + $0x2d2] ss:$4 sm:$0xff] }
  0xb0   : > { %471 = vst.msk [vmem:[#allocation2 + $0x29] sm:$0xff] %vm170_vm0, %v342_v51  ;;  %v1105_v34 = vpack.c.bf16 %v1094_v31, %v1094_v31  ;;  %v346_v37 = vld [vmem:[%s1650_s28 + $0x20] sm:$0xff]  ;;  %v347_v38 = vld [vmem:[%s1650_s28 + $0x28] sm:$0xff]  ;;  %v381_v51 = vld [vmem:[%s1650_s28 + $0x138] sm:$0xff] }
  0xb1   : > { %936 = vrot.lane.b32.xlu1 %v913_v29, %s1562_s6  ;;  %932 = vrot.lane.b32.xlu2 %v911_v30, %s1562_s6  ;;  %472 = vst.msk [vmem:[#allocation2 + $0x31] sm:$0xff] %vm170_vm0, %v343_v52  ;;  %v613_v29 = vld [vmem:[#allocation2 + $0x460] ss:$4 sm:$0xff]  ;;  %v619_v30 = vpack.c.bf16 %v609_v26, %v609_v26 }
  0xb2   : > { %v970_v44 = vld [vmem:[#allocation2 + $0x4b0] ss:$4 sm:$0xff]  ;;  %473 = vst.msk [vmem:[#allocation2 + $0x39] sm:$0xff] %vm170_vm0, %v344_v53  ;;  %v1035_v59 = vld [vmem:[#allocation2 + $0x4b1] ss:$4 sm:$0xff] }
  0xb3   : > { %v978_v46 = vpack.c.bf16 %v970_v44, %v970_v44  ;;  %474 = vst.msk [vmem:[#allocation2 + $0x41] sm:$0xff] %vm170_vm0, %v345_v54  ;;  %v1043_v2 = vpack.c.bf16 %v1035_v59, %v1035_v59  ;;  %v1100_v43 = vld [vmem:[#allocation2 + $0x4b2] ss:$4 sm:$0xff] }
  0xb4   : > { %503 = vst.msk [vmem:[#allocation2 + $0x169] sm:$0xff] %vm170_vm0, %v374_v61  ;;  %v1108_v44 = vpack.c.bf16 %v1100_v43, %v1100_v43  ;;  %v379_v49 = vld [vmem:[%s1650_s28 + $0x128] sm:$0xff]  ;;  %v394_v52 = vld [vmem:[%s1650_s28 + $0x1a0] sm:$0xff] }
  0xb5   : > { %934 = vrot.lane.b32.xlu0 %v912_v32, %s1562_s6  ;;  %504 = vst.msk [vmem:[#allocation2 + $0x171] sm:$0xff] %vm170_vm0, %v375_v62  ;;  %v621_v32 = vpack.c.bf16 %v613_v29, %v613_v29  ;;  %v362_v62 = vld [vmem:[%s1650_s28 + $0xa0] sm:$0xff] }
  0xb6   : > { %v636_v50 = vld [vmem:[#allocation2 + $0x141] ss:$4 sm:$0xff]  ;;  %505 = vst.msk [vmem:[#allocation2 + $0x179] sm:$0xff] %vm170_vm0, %v376_v63  ;;  %v701_v9 = vld [vmem:[#allocation2 + $0x142] ss:$4 sm:$0xff] }
  0xb7   : > { %v649_v56 = vpack.c.bf16 %v636_v50, %v636_v50  ;;  %506 = vst.msk [vmem:[#allocation2 + $0x181] sm:$0xff] %vm170_vm0, %v377_v0  ;;  %v714_v15 = vpack.c.bf16 %v701_v9, %v701_v9  ;;  %v380_v50 = vld [vmem:[%s1650_s28 + $0x130] sm:$0xff]  ;;  %v363_v63 = vld [vmem:[%s1650_s28 + $0xa8] sm:$0xff] }
  0xb8   : > { %519 = vst.msk [vmem:[#allocation2 + $0x209] sm:$0xff] %vm170_vm0, %v390_v1  ;;  %v364_v1 = vld [vmem:[%s1650_s28 + $0xb0] sm:$0xff] }
  0xb9   : > { %999 = vrot.lane.b32.xlu1 %v977_v39, %s1563_s7  ;;  %995 = vrot.lane.b32.xlu2 %v975_v40, %s1563_s7  ;;  %520 = vst.msk [vmem:[#allocation2 + $0x211] sm:$0xff] %vm170_vm0, %v391_v4  ;;  %v348_v39 = vld [vmem:[%s1650_s28 + $0x30] sm:$0xff]  ;;  %v349_v40 = vld [vmem:[%s1650_s28 + $0x38] sm:$0xff] }
  0xba   : > { %521 = vst.msk [vmem:[#allocation2 + $0x219] sm:$0xff] %vm170_vm0, %v392_v6  ;;  %v761_v35 = vld [vmem:[#allocation2 + $0x28] ss:$4 sm:$0xff]  ;;  %v826_v61 = vld [vmem:[#allocation2 + $0x29] ss:$4 sm:$0xff] }
  0xbb   : > { %522 = vst.msk [vmem:[#allocation2 + $0x221] sm:$0xff] %vm170_vm0, %v393_v7  ;;  %v776_v41 = vpack.c.bf16 %v761_v35, %v761_v35  ;;  %v841_v4 = vpack.c.bf16 %v826_v61, %v826_v61  ;;  %v891_v14 = vld [vmem:[#allocation2 + $0x2a] ss:$4 sm:$0xff] }
  0xbc   : > { %487 = vst.msk [vmem:[#allocation2 + $0xc9] sm:$0xff] %vm170_vm0, %v358_v11 }
  0xbd   : > { %997 = vrot.lane.b32.xlu0 %v976_v42, %s1563_s7  ;;  %488 = vst.msk [vmem:[#allocation2 + $0xd1] sm:$0xff] %vm170_vm0, %v359_v12  ;;  %v1107_v42 = vpack.c.bf16 %v1098_v36, %v1098_v36 }
  0xbe   : > { %489 = vst.msk [vmem:[#allocation2 + $0xd9] sm:$0xff] %vm170_vm0, %v360_v13  ;;  %v830_v60 = vld [vmem:[#allocation2 + $0x169] ss:$4 sm:$0xff] }
  0xbf   : > { %627 = vst.msk [vmem:[#allocation3 + $0x10] sm:$0xf] %vm622_vm1, %v618_v18  ;;  %v895_v18 = vld [vmem:[#allocation2 + $0x16a] ss:$4 sm:$0xff] }
  0xc0   : > { %629 = vst.msk [vmem:[#allocation3 + $0x18] sm:$0xf] %vm622_vm1, %v620_v20 }
  0xc1   : > { %665 = vrot.lane.b32.xlu1 %v648_v45, %s1558_s29  ;;  %1001 = vrot.lane.b32.xlu2 %v978_v46, %s1563_s7  ;;  %694 = vst.msk [vmem:[#allocation3 + $0x18] sm:$0xf] %vm687_vm2, %v676_v22  ;;  %v908_v22 = vpack.c.bf16 %v895_v18, %v895_v18 }
  0xc2   : > { %490 = vst.msk [vmem:[#allocation2 + $0xe1] sm:$0xff] %vm170_vm0, %v361_v21  ;;  %v767_v45 = vld [vmem:[#allocation2 + $0x208] ss:$4 sm:$0xff]  ;;  %v832_v9 = vld [vmem:[#allocation2 + $0x209] ss:$4 sm:$0xff] }
  0xc3   : > { %628 = vst.msk [vmem:[#allocation3 + $0x14] sm:$0xf] %vm622_vm1, %v619_v30  ;;  %v779_v53 = vpack.c.bf16 %v767_v45, %v767_v45  ;;  %v844_v13 = vpack.c.bf16 %v832_v9, %v832_v9  ;;  %v601_v45 = vld [vmem:[#allocation2 + $0xa0] ss:$4 sm:$0xff] }
  0xc4   : > { %630 = vst.msk [vmem:[#allocation3 + $0x1c] sm:$0xf] %vm622_vm1, %v621_v32  ;;  %v1416_v9 = vld [vmem:[%s2231_s1 + $0x8] sm:$0xf] }
  0xc5   : > { %663 = vrot.lane.b32.xlu0 %v647_v48, %s1558_s29  ;;  %475 = vst.msk [vmem:[#allocation2 + $0x51] sm:$0xff] %vm170_vm0, %v346_v37  ;;  %v378_v48 = vld [vmem:[%s1650_s28 + $0x120] sm:$0xff] }
  0xc6   : > { %476 = vst.msk [vmem:[#allocation2 + $0x59] sm:$0xff] %vm170_vm0, %v347_v38 }
  0xc7   : > { %477 = vst.msk [vmem:[#allocation2 + $0x61] sm:$0xff] %vm170_vm0, %v348_v39 }
  0xc8   : > { %478 = vst.msk [vmem:[#allocation2 + $0x69] sm:$0xff] %vm170_vm0, %v349_v40 }
  0xc9   : > { %1060 = vrot.lane.b32.xlu1 %v1040_v55, %s1564_s8  ;;  %667 = vrot.lane.b32.xlu2 %v649_v56, %s1558_s29  ;;  %v763_v47 = vld [vmem:[#allocation2 + $0xc8] ss:$4 sm:$0xff]  ;;  %507 = vst.msk [vmem:[#allocation2 + $0x191] sm:$0xff] %vm170_vm0, %v378_v48  ;;  %v828_v5 = vld [vmem:[#allocation2 + $0xc9] ss:$4 sm:$0xff]  ;;  %v615_v48 = vpack.c.bf16 %v601_v45, %v601_v45 }
  0xca   : > { %508 = vst.msk [vmem:[#allocation2 + $0x199] sm:$0xff] %vm170_vm0, %v379_v49  ;;  %v777_v54 = vpack.c.bf16 %v763_v47, %v763_v47  ;;  %v395_v55 = vld [vmem:[%s1650_s28 + $0x1a8] sm:$0xff]  ;;  %v842_v7 = vpack.c.bf16 %v828_v5, %v828_v5 }
  0xcb   : > { %509 = vst.msk [vmem:[#allocation2 + $0x1a1] sm:$0xff] %vm170_vm0, %v380_v50  ;;  %v765_v56 = vld [vmem:[#allocation2 + $0x168] ss:$4 sm:$0xff] }
  0xcc   : > { %510 = vst.msk [vmem:[#allocation2 + $0x1a9] sm:$0xff] %vm170_vm0, %v381_v51  ;;  %v778_v59 = vpack.c.bf16 %v765_v56, %v765_v56 }
  0xcd   : > { %669 = vrot.lane.b32.xlu0 %v650_v58, %s1558_s29  ;;  %v397_v58 = vld [vmem:[%s1650_s28 + $0x1b8] sm:$0xff]  ;;  %523 = vst.msk [vmem:[#allocation2 + $0x231] sm:$0xff] %vm170_vm0, %v394_v52 }
  0xce   : > { %524 = vst.msk [vmem:[#allocation2 + $0x239] sm:$0xff] %vm170_vm0, %v395_v55 }
  0xcf   : > { %525 = vst.msk [vmem:[#allocation2 + $0x241] sm:$0xff] %vm170_vm0, %v396_v57  ;;  %v956_v17 = vld [vmem:[#allocation2 + $0x50] ss:$4 sm:$0xff]  ;;  %v1021_v38 = vld [vmem:[#allocation2 + $0x51] ss:$4 sm:$0xff] }
  0xd0   : > { %526 = vst.msk [vmem:[#allocation2 + $0x249] sm:$0xff] %vm170_vm0, %v397_v58  ;;  %v971_v21 = vpack.c.bf16 %v956_v17, %v956_v17  ;;  %v1086_v58 = vld [vmem:[#allocation2 + $0x52] ss:$4 sm:$0xff] }
  0xd1   : > { %1066 = vrot.lane.b32.xlu1 %v1043_v2, %s1564_s8  ;;  %1062 = vrot.lane.b32.xlu2 %v1041_v3, %s1564_s8  ;;  %v365_v2 = vld [vmem:[%s1650_s28 + $0xb8] sm:$0xff]  ;;  %491 = vst.msk [vmem:[#allocation2 + $0xf1] sm:$0xff] %vm170_vm0, %v362_v62  ;;  %v843_v3 = vpack.c.bf16 %v830_v60, %v830_v60  ;;  %v1101_v60 = vpack.c.bf16 %v1086_v58, %v1086_v58  ;;  %v1432_v17 = vld [vmem:[%s2231_s1] sm:$0xff]  ;;  %s1391_s28 = sshll.u32 %s161_s25, 6 }
  0xd2   : > { %492 = vst.msk [vmem:[#allocation2 + $0xf9] sm:$0xff] %vm170_vm0, %v363_v63  ;;  %s2178_s29 = scalar_lea.vmem [#allocation4], %s1391_s28 }
  0xd3   : > { %493 = vst.msk [vmem:[#allocation2 + $0x101] sm:$0xff] %vm170_vm0, %v364_v1  ;;  %v960_v32 = vld [vmem:[#allocation2 + $0x190] ss:$4 sm:$0xff]  ;;  %v1025_v37 = vld [vmem:[#allocation2 + $0x191] ss:$4 sm:$0xff] }
  0xd4   : > { %494 = vst.msk [vmem:[#allocation2 + $0x109] sm:$0xff] %vm170_vm0, %v365_v2  ;;  %v973_v35 = vpack.c.bf16 %v960_v32, %v960_v32  ;;  %v1090_v61 = vld [vmem:[#allocation2 + $0x192] ss:$4 sm:$0xff] }
  0xd5   : > { %1064 = vrot.lane.b32.xlu0 %v1042_v8, %s1564_s8  ;;  %v893_v8 = vld [vmem:[#allocation2 + $0xca] ss:$4 sm:$0xff]  ;;  %624 = vst.msk [vmem:[#allocation3 + $0x4] sm:$0xf] %vm622_vm1, %v615_v48 }
  0xd6   : > { %v907_v12 = vpack.c.bf16 %v893_v8, %v893_v8 }
  0xd7   : > { %v962_v26 = vld [vmem:[#allocation2 + $0x230] ss:$4 sm:$0xff]  ;;  %v1027_v49 = vld [vmem:[#allocation2 + $0x231] ss:$4 sm:$0xff]  ;;  %v1092_v1 = vld [vmem:[#allocation2 + $0x232] ss:$4 sm:$0xff] }
  0xd8   : > { %v974_v30 = vpack.c.bf16 %v962_v26, %v962_v26  ;;  %v1039_v55 = vpack.c.bf16 %v1027_v49, %v1027_v49 }
  0xd9   : > { %732 = vrot.lane.b32.xlu1 %v714_v15, %s1559_s30  ;;  %728 = vrot.lane.b32.xlu2 %v712_v16, %s1559_s30  ;;  %v906_v16 = vpack.c.bf16 %v891_v14, %v891_v14 }
  0xdb   : > { %v1023_v43 = vld [vmem:[#allocation2 + $0xf1] ss:$4 sm:$0xff]  ;;  %v1088_v47 = vld [vmem:[#allocation2 + $0xf2] ss:$4 sm:$0xff] }
  0xdc   : > { %v1102_v52 = vpack.c.bf16 %v1088_v47, %v1088_v47 }
  0xdd   : > { %730 = vrot.lane.b32.xlu0 %v713_v23, %s1559_s30  ;;  %v897_v23 = vld [vmem:[#allocation2 + $0x20a] ss:$4 sm:$0xff] }
  0xde   : > { %v909_v25 = vpack.c.bf16 %v897_v23, %v897_v23 }
  0xdf   : > { %v2026_v33 = vpop.permute.xlu2 %736 }
  0xe1   : > { %1127 = vrot.lane.b32.xlu1 %v1106_v27, %s1565_s9  ;;  %734 = vrot.lane.b32.xlu2 %v715_v28, %s1559_s30  ;;  %v958_v27 = vld [vmem:[#allocation2 + $0xf0] ss:$4 sm:$0xff]  ;;  %s1434_s30 = sshll.u32 %s1610_s16, 6  ;;  %s1264_s16 = scalar_lea.sflag [#allocation5], %s161_s25 }
  0xe2   : > { %v972_v31 = vpack.c.bf16 %v958_v27, %v958_v27 }
  0xe5   : > { %1125 = vrot.lane.b32.xlu0 %v1105_v34, %s1565_s9  ;;  %v599_v34 = vld [vmem:[#allocation2] ss:$4 sm:$0xff] }
  0xe6   : > { %v614_v36 = vpack.c.bf16 %v599_v34, %v599_v34 }
  0xe7   : > { %v739_v46 = vpop.permute.xlu2 %738 }
  0xe8   : > { %623 = vst.msk [vmem:[#allocation3] sm:$0xf] %vm622_vm1, %v614_v36 }
  0xe9   : > { %792 = vrot.lane.b32.xlu1 %v776_v41, %s1560_s4  ;;  %1129 = vrot.lane.b32.xlu2 %v1107_v42, %s1565_s9  ;;  %v1038_v41 = vpack.c.bf16 %v1025_v37, %v1025_v37  ;;  %v1036_v42 = vpack.c.bf16 %v1021_v38, %v1021_v38 }
  0xed   : > { %1131 = vrot.lane.b32.xlu0 %v1108_v44, %s1565_s9 }
  0xf1   : > { %798 = vrot.lane.b32.xlu1 %v779_v53, %s1560_s4  ;;  %794 = vrot.lane.b32.xlu2 %v777_v54, %s1560_s4  ;;  %v605_v53 = vld [vmem:[#allocation2 + $0x1e0] ss:$4 sm:$0xff] }
  0xf2   : > { %v603_v54 = vld [vmem:[#allocation2 + $0x140] ss:$4 sm:$0xff]  ;;  %v617_v56 = vpack.c.bf16 %v605_v53, %v605_v53 }
  0xf3   : > { %v801_v0 = vpop.permute.xlu2 %800  ;;  %v616_v57 = vpack.c.bf16 %v603_v54, %v603_v54 }
  0xf4   : > { %626 = vst.msk [vmem:[#allocation3 + $0xc] sm:$0xf] %vm622_vm1, %v617_v56 }
  0xf5   : > { %796 = vrot.lane.b32.xlu0 %v778_v59, %s1560_s4  ;;  %625 = vst.msk [vmem:[#allocation3 + $0x8] sm:$0xf] %vm622_vm1, %v616_v57  ;;  %v1492_v57 = vld [vmem:[%s2232_s2] ss:$0 sm:$0xff] }
  0xf7   : > { %v672_v6 = vpop.permute.xlu0 %671 }
  0xf8   : > { %692 = vst.msk [vmem:[#allocation3 + $0x10] sm:$0xf] %vm687_vm2, %v672_v6 }
  0xf9   : > { %861 = vrot.lane.b32.xlu1 %v843_v3, %s1561_s5  ;;  %757 = vst.msk [vmem:[#allocation3 + $0x10] sm:$0xf] %vm752_vm3, %v2026_v33  ;;  %857 = vrot.lane.b32.xlu2 %v841_v4, %s1561_s5  ;;  %v1104_v3 = vpack.c.bf16 %v1092_v1, %v1092_v1 }
  0xfa   : > { %821 = vst.msk [vmem:[#allocation3 + $0x10] sm:$0xf] %vm816_vm4, %v801_v0  ;;  %v1103_v0 = vpack.c.bf16 %v1090_v61, %v1090_v61 }
  0xfb   : > { %v678_v10 = vpop.permute.xlu1 %677  ;;  %v807_v11 = vpop.permute.xlu2 %806 }
  0xfc   : > { %695 = vst.msk [vmem:[#allocation3 + $0x1c] sm:$0xf] %vm687_vm2, %v678_v10  ;;  %v1433_v10 = vld [vmem:[%s2231_s1 + $0x8] sm:$0x30] }
  0xfd   : > { %859 = vrot.lane.b32.xlu0 %v842_v7, %s1561_s5 }
  0xff   : > { %v674_v15 = vpop.permute.xlu0 %673 }
 0x100   : > { %693 = vst.msk [vmem:[#allocation3 + $0x14] sm:$0xf] %vm687_vm2, %v674_v15 }
 0x101   : > { %924 = vrot.lane.b32.xlu1 %v907_v12, %s1562_s6  ;;  %758 = vst.msk [vmem:[#allocation3 + $0x14] sm:$0xf] %vm752_vm3, %v739_v46  ;;  %863 = vrot.lane.b32.xlu2 %v844_v13, %s1561_s5  ;;  %v1037_v46 = vpack.c.bf16 %v1023_v43, %v1023_v43  ;;  %v1566_v12 = vmov 65535  }
 0x102   : > { %v1212_v13 = vsel %vm1210_vm9, 4294967295, %v1566_v12 }
 0x103   : > { %v743_v19 = vpop.permute.xlu1 %742  ;;  %v870_v20 = vpop.permute.xlu2 %869  ;;  %v1213_v15 = vsel %vm1211_vm10, %v1212_v13, 0 }
 0x104   : > { %760 = vst.msk [vmem:[#allocation3 + $0x1c] sm:$0xf] %vm752_vm3, %v743_v19 }
 0x105   : > { %922 = vrot.lane.b32.xlu0 %v906_v16, %s1562_s6  ;;  %824 = vst.msk [vmem:[#allocation3 + $0x1c] sm:$0xf] %vm816_vm4, %v807_v11  ;;  %v1417_v11 = vor.u32 %v1433_v10, %v1416_v9 }
 0x107   : > { %v741_v24 = vpop.permute.xlu0 %740  ;;  %v1215_v16 = vand.u32 %v1417_v11, %v1213_v15 }
 0x108   : > { %759 = vst.msk [vmem:[#allocation3 + $0x18] sm:$0xf] %vm752_vm3, %v741_v24 }
 0x109   : > { %987 = vrot.lane.b32.xlu1 %v971_v21, %s1563_s7  ;;  %926 = vrot.lane.b32.xlu2 %v908_v22, %s1562_s6 }
 0x10a   : > { %1436 = vmatpush.bf16.msra.mxu2 %v1215_v16  ;;  %1437 = vmatpush.bf16.msra.mxu3 %v1215_v16 }
 0x10b   : > { %v805_v28 = vpop.permute.xlu1 %804  ;;  %v933_v29 = vpop.permute.xlu2 %932  ;;  %1223 = vmatpush.bf16.msra.mxu0 %v1215_v16  ;;  %1435 = vmatpush.bf16.msra.mxu1 %v1215_v16 }
 0x10c   : > { %823 = vst.msk [vmem:[#allocation3 + $0x18] sm:$0xf] %vm816_vm4, %v805_v28 }
 0x10d   : > { %928 = vrot.lane.b32.xlu0 %v909_v25, %s1562_s6  ;;  %888 = vst.msk [vmem:[#allocation3 + $0x18] sm:$0xf] %vm881_vm5, %v870_v20  ;;  %s1275_s6 = scalar_lea.hbm %s2233_s3, %s1434_s30 }
 0x10e   : > { %1439 = vmatpush.bf16.msra.mxu2 %v1432_v17  ;;  %1440 = vmatpush.bf16.msra.mxu3 %v1432_v17 }
 0x10f   : > { %v803_v33 = vpop.permute.xlu0 %802  ;;  %1224 = vmatpush.bf16.msra.mxu0 %v1432_v17  ;;  %1438 = vmatpush.bf16.msra.mxu1 %v1432_v17 }
 0x110   : > { %822 = vst.msk [vmem:[#allocation3 + $0x14] sm:$0xf] %vm816_vm4, %v803_v33 }
 0x111   : > { %993 = vrot.lane.b32.xlu1 %v974_v30, %s1563_s7  ;;  %989 = vrot.lane.b32.xlu2 %v972_v31, %s1563_s7 }
 0x113   : > { %v868_v39 = vpop.permute.xlu1 %867  ;;  %v996_v40 = vpop.permute.xlu2 %995 }
 0x114   : > { %887 = vst.msk [vmem:[#allocation3 + $0x14] sm:$0xf] %vm881_vm5, %v868_v39 }
 0x115   : > { %991 = vrot.lane.b32.xlu0 %v973_v35, %s1563_s7  ;;  %952 = vst.msk [vmem:[#allocation3 + $0x14] sm:$0xf] %vm946_vm6, %v933_v29  ;;  %s1276_s7 = sshll.u32 %s2178_s29, 4  ;;  %s1277_s7 = int_to_ptr.vmem [resolvable:$true] %s1276_s7 }
 0x117   : > { %v866_v44 = vpop.permute.xlu0 %865 }
 0x118   : > { %886 = vst.msk [vmem:[#allocation3 + $0x10] sm:$0xf] %vm881_vm5, %v866_v44 }
 0x119   : > { %1056 = vrot.lane.b32.xlu1 %v1038_v41, %s1564_s8  ;;  %1052 = vrot.lane.b32.xlu2 %v1036_v42, %s1564_s8 }
 0x11b   : > { %v931_v50 = vpop.permute.xlu1 %930  ;;  %v1002_v51 = vpop.permute.xlu2 %1001 }
 0x11c   : > { %951 = vst.msk [vmem:[#allocation3 + $0x10] sm:$0xf] %vm946_vm6, %v931_v50 }
 0x11d   : > { %1054 = vrot.lane.b32.xlu0 %v1037_v46, %s1564_s8  ;;  %1016 = vst.msk [vmem:[#allocation3 + $0x10] sm:$0xf] %vm1011_vm7, %v996_v40 }
 0x11f   : > { %v872_v59 = vpop.permute.xlu0 %871 }
 0x120   : > { %889 = vst.msk [vmem:[#allocation3 + $0x1c] sm:$0xf] %vm881_vm5, %v872_v59 }
 0x121   : > { %1119 = vrot.lane.b32.xlu1 %v1102_v52, %s1565_s9  ;;  %1058 = vrot.lane.b32.xlu2 %v1039_v55, %s1564_s8  ;;  %s1278_s8 = sshll.u32 %s1275_s6, 4  ;;  %s1279_s8 = int_to_ptr.hbm [resolvable:$true] %s1278_s8 }
 0x123   : > { %v937_v62 = vpop.permute.xlu1 %936  ;;  %v668_v63 = vpop.permute.xlu2 %667 }
 0x124   : > { %954 = vst.msk [vmem:[#allocation3 + $0x1c] sm:$0xf] %vm946_vm6, %v937_v62 }
 0x125   : > { %1117 = vrot.lane.b32.xlu0 %v1101_v60, %s1565_s9  ;;  %1019 = vst.msk [vmem:[#allocation3 + $0x1c] sm:$0xf] %vm1011_vm7, %v1002_v51 }
 0x126   : > { %690 = vst.msk [vmem:[#allocation3 + $0x8] sm:$0xf] %vm687_vm2, %v668_v63 }
 0x127   : > { %v935_v2 = vpop.permute.xlu0 %934 }
 0x128   : > { %953 = vst.msk [vmem:[#allocation3 + $0x18] sm:$0xf] %vm946_vm6, %v935_v2 }
 0x129   : > { %1121 = vrot.lane.b32.xlu2 %v1103_v0, %s1565_s9 }
 0x12b   : > { %v1000_v4 = vpop.permute.xlu1 %999  ;;  %v1063_v5 = vpop.permute.xlu2 %1062 }
 0x12c   : > { %1018 = vst.msk [vmem:[#allocation3 + $0x18] sm:$0xf] %vm1011_vm7, %v1000_v4 }
 0x12d   : > { %1123 = vrot.lane.b32.xlu0 %v1104_v3, %s1565_s9  ;;  %s1507_s9 = sshra.s32 %s1279_s8, 4  ;;  %s1508_s9 = int_to_ptr.hbm [resolvable:$true] %s1507_s9 }
 0x12e   : > { %s1509_s10 = scalar_lea.hbm %s1508_s9, 64  ;;  %p1514_p0 = scmp.lt.s32.totalorder %s1508_s9, %s2233_s3 }
 0x12f   : > { %v998_v6 = vpop.permute.xlu0 %997  ;;  %p1510_p11 = scmp.ne.s32.totalorder %s1508_s9, %s1509_s10  ;;  %p1515_p1 = scmp.lt.s32.totalorder %s1513_s19, %s1509_s10 }
 0x130   : > { %1017 = vst.msk [vmem:[#allocation3 + $0x14] sm:$0xf] %vm1011_vm7, %v998_v6 }
 0x131   : > { %1082 = vst.msk [vmem:[#allocation3 + $0x14] sm:$0xf] %vm1076_vm8, %v1063_v5  ;;  %p1511_p12 = pnand %p1510_p11, %p1627_p5  ;;  %p1516_p2 = por %p1515_p1, %p1514_p0 }
 0x133   : > { %v666_v7 = vpop.permute.xlu1 %665  ;;  %v729_v8 = vpop.permute.xlu2 %728  ;;  %p1512_p13 = pneg %p1511_p12 }
 0x134   : > { %689 = vst.msk [vmem:[#allocation3 + $0x4] sm:$0xf] %vm687_vm2, %v666_v7 }
 0x135   : > { %p1517_p3 = pnand %p1516_p2, %p1512_p13 }
 0x137   : > { %v664_v14 = vpop.permute.xlu0 %663 }
 0x138   : > { %688 = vst.msk [vmem:[#allocation3] sm:$0xf] %vm687_vm2, %v664_v14 }
 0x139   : > { %753 = vst.msk [vmem:[#allocation3] sm:$0xf] %vm752_vm3, %v729_v8 }
 0x13b   : > { %v1061_v18 = vpop.permute.xlu1 %1060  ;;  %v735_v19 = vpop.permute.xlu2 %734 }
 0x13c   : > { %1081 = vst.msk [vmem:[#allocation3 + $0x10] sm:$0xf] %vm1076_vm8, %v1061_v18 }
 0x13f   : > { %v670_v20 = vpop.permute.xlu0 %669 }
 0x140   : > { %691 = vst.msk [vmem:[#allocation3 + $0xc] sm:$0xf] %vm687_vm2, %v670_v20 }
 0x141   : > { %756 = vst.msk [vmem:[#allocation3 + $0xc] sm:$0xf] %vm752_vm3, %v735_v19 }
 0x143   : > { %v1067_v21 = vpop.permute.xlu1 %1066  ;;  %v1130_v22 = vpop.permute.xlu2 %1129 }
 0x144   : > { %1084 = vst.msk [vmem:[#allocation3 + $0x1c] sm:$0xf] %vm1076_vm8, %v1067_v21 }
 0x147   : > { %v1065_v23 = vpop.permute.xlu0 %1064 }
 0x148   : > { %1083 = vst.msk [vmem:[#allocation3 + $0x18] sm:$0xf] %vm1076_vm8, %v1065_v23 }
 0x149   : > { %1148 = vst.msk [vmem:[#allocation3 + $0x18] sm:$0xf] %vm1141_vm11, %v1130_v22 }
 0x14b   : > { %v733_v24 = vpop.permute.xlu1 %732  ;;  %v795_v25 = vpop.permute.xlu2 %794 }
 0x14c   : > { %755 = vst.msk [vmem:[#allocation3 + $0x8] sm:$0xf] %vm752_vm3, %v733_v24 }
 0x14f   : > { %v731_v26 = vpop.permute.xlu0 %730 }
 0x150   : > { %754 = vst.msk [vmem:[#allocation3 + $0x4] sm:$0xf] %vm752_vm3, %v731_v26 }
 0x151   : > { %818 = vst.msk [vmem:[#allocation3 + $0x4] sm:$0xf] %vm816_vm4, %v795_v25 }
 0x153   : > { %v1128_v27 = vpop.permute.xlu1 %1127  ;;  %v858_v28 = vpop.permute.xlu2 %857 }
 0x154   : > { %1147 = vst.msk [vmem:[#allocation3 + $0x14] sm:$0xf] %vm1141_vm11, %v1128_v27 }
 0x157   : > { %v1126_v29 = vpop.permute.xlu0 %1125 }
 0x158   : > { %1146 = vst.msk [vmem:[#allocation3 + $0x10] sm:$0xf] %vm1141_vm11, %v1126_v29 }
 0x15b   : > { %v793_v30 = vpop.permute.xlu1 %792  ;;  %v864_v31 = vpop.permute.xlu2 %863 }
 0x15c   : > { %817 = vst.msk [vmem:[#allocation3] sm:$0xf] %vm816_vm4, %v793_v30 }
 0x15d   : > { %882 = vst.msk [vmem:[#allocation3] sm:$0xf] %vm881_vm5, %v858_v28 }
 0x15f   : > { %v1132_v32 = vpop.permute.xlu0 %1131  ;;  %v1430_v33 = vld [vmem:[#allocation3 + $0x10] sm:$0xff] }
 0x160   : > { %1149 = vst.msk [vmem:[#allocation3 + $0x1c] sm:$0xf] %vm1141_vm11, %v1132_v32  ;;  %1420 = vmatmul.msk.bf16.vlgmr.msra.gmra.mxu2 %vm1197_vm12, %v1430_v33 }
 0x163   : > { %v799_v34 = vpop.permute.xlu1 %798  ;;  %v927_v35 = vpop.permute.xlu2 %926 }
 0x164   : > { %820 = vst.msk [vmem:[#allocation3 + $0xc] sm:$0xf] %vm816_vm4, %v799_v34 }
 0x165   : > { %885 = vst.msk [vmem:[#allocation3 + $0xc] sm:$0xf] %vm881_vm5, %v864_v31 }
 0x167   : > { %v797_v36 = vpop.permute.xlu0 %796  ;;  %v1431_v37 = vld [vmem:[#allocation3 + $0x18] sm:$0xff] }
 0x168   : > { %819 = vst.msk [vmem:[#allocation3 + $0x8] sm:$0xf] %vm816_vm4, %v797_v36  ;;  %1421 = vmatmul.msk.bf16.vlgmr.msra.gmra.mxu3 %vm1197_vm12, %v1431_v37 }
 0x16b   : > { %v862_v38 = vpop.permute.xlu1 %861  ;;  %v990_v39 = vpop.permute.xlu2 %989 }
 0x16c   : > { %884 = vst.msk [vmem:[#allocation3 + $0x8] sm:$0xf] %vm881_vm5, %v862_v38 }
 0x16d   : > { %949 = vst.msk [vmem:[#allocation3 + $0x8] sm:$0xf] %vm946_vm6, %v927_v35 }
 0x16f   : > { %v860_v40 = vpop.permute.xlu0 %859 }
 0x170   : > { %883 = vst.msk [vmem:[#allocation3 + $0x4] sm:$0xf] %vm881_vm5, %v860_v40 }
 0x173   : > { %v925_v41 = vpop.permute.xlu1 %924  ;;  %v1053_v42 = vpop.permute.xlu2 %1052 }
 0x174   : > { %948 = vst.msk [vmem:[#allocation3 + $0x4] sm:$0xf] %vm946_vm6, %v925_v41 }
 0x175   : > { %1013 = vst.msk [vmem:[#allocation3 + $0x4] sm:$0xf] %vm1011_vm7, %v990_v39 }
 0x177   : > { %v923_v43 = vpop.permute.xlu0 %922 }
 0x178   : > { %947 = vst.msk [vmem:[#allocation3] sm:$0xf] %vm946_vm6, %v923_v43 }
 0x17b   : > { %v988_v44 = vpop.permute.xlu1 %987  ;;  %v1059_v46 = vpop.permute.xlu2 %1058 }
 0x17c   : > { %1012 = vst.msk [vmem:[#allocation3] sm:$0xf] %vm1011_vm7, %v988_v44 }
 0x17d   : > { %1077 = vst.msk [vmem:[#allocation3] sm:$0xf] %vm1076_vm8, %v1053_v42 }
 0x17f   : > { %v929_v45 = vpop.permute.xlu0 %928 }
 0x180   : > { %950 = vst.msk [vmem:[#allocation3 + $0xc] sm:$0xf] %vm946_vm6, %v929_v45 }
 0x183   : > { %v994_v47 = vpop.permute.xlu1 %993  ;;  %v1122_v49 = vpop.permute.xlu2 %1121 }
 0x184   : > { %1015 = vst.msk [vmem:[#allocation3 + $0xc] sm:$0xf] %vm1011_vm7, %v994_v47 }
 0x185   : > { %1080 = vst.msk [vmem:[#allocation3 + $0xc] sm:$0xf] %vm1076_vm8, %v1059_v46 }
 0x187   : > { %v992_v48 = vpop.permute.xlu0 %991 }
 0x188   : > { %1014 = vst.msk [vmem:[#allocation3 + $0x8] sm:$0xf] %vm1011_vm7, %v992_v48 }
 0x18b   : > { %v1057_v50 = vpop.permute.xlu1 %1056 }
 0x18c   : > { %1079 = vst.msk [vmem:[#allocation3 + $0x8] sm:$0xf] %vm1076_vm8, %v1057_v50 }
 0x18d   : > { %1144 = vst.msk [vmem:[#allocation3 + $0x8] sm:$0xf] %vm1141_vm11, %v1122_v49 }
 0x18f   : > { %v1055_v51 = vpop.permute.xlu0 %1054 }
 0x190   : > { %1078 = vst.msk [vmem:[#allocation3 + $0x4] sm:$0xf] %vm1076_vm8, %v1055_v51 }
 0x193   : > { %v1120_v52 = vpop.permute.xlu1 %1119 }
 0x194   : > { %1143 = vst.msk [vmem:[#allocation3 + $0x4] sm:$0xf] %vm1141_vm11, %v1120_v52 }
 0x197   : > { %v1118_v53 = vpop.permute.xlu0 %1117 }
 0x198   : > { %1142 = vst.msk [vmem:[#allocation3] sm:$0xf] %vm1141_vm11, %v1118_v53 }
 0x19f   : > { %v1124_v54 = vpop.permute.xlu0 %1123  ;;  %v1428_v55 = vld [vmem:[#allocation3] sm:$0xff] }
 0x1a0   : > { %1145 = vst.msk [vmem:[#allocation3 + $0xc] sm:$0xf] %vm1141_vm11, %v1124_v54  ;;  %1418 = vmatmul.msk.bf16.vlgmr.msra.gmra.mxu0 %vm1197_vm12, %v1428_v55 }
 0x1a7   : > { %v1429_v56 = vld [vmem:[#allocation3 + $0x8] sm:$0xff] }
 0x1a8   : > { %1419 = vmatmul.msk.bf16.vlgmr.msra.gmra.mxu1 %vm1197_vm12, %v1429_v56 }
 0x1e3   : > { %v1236_v58 = vpop.f32.mrf.mxu2 }
 0x1e4   : > { %v1237_v59 = vadd.f32 %v1492_v57, %v1236_v58 }
 0x1e6   : > { %v1250_v60 = vmax.f32 %v1237_v59, 0.0 }
 0x1e8   : > { %1259 = vst.msk [vmem:[%s2178_s29 + $0x20] sm:$0xff] %vm1254_vm13, %v1250_v60 }
 0x1eb   : > { %v1238_v61 = vpop.f32.mrf.mxu2  ;;  %v1241_v62 = vpop.f32.mrf.mxu3 }
 0x1ec   : > { %v1239_v63 = vadd.f32 %v1492_v57, %v1238_v61  ;;  %v1242_v0 = vadd.f32 %v1492_v57, %v1241_v62 }
 0x1ee   : > { %v1251_v1 = vmax.f32 %v1239_v63, 0.0  ;;  %v1252_v2 = vmax.f32 %v1242_v0, 0.0 }
 0x1f0   : > { %1260 = vst.msk [vmem:[%s2178_s29 + $0x28] sm:$0xff] %vm1254_vm13, %v1251_v1 }
 0x1f1   : > { %1261 = vst.msk [vmem:[%s2178_s29 + $0x30] sm:$0xff] %vm1254_vm13, %v1252_v2 }
 0x1f3   : > { %v1243_v3 = vpop.f32.mrf.mxu3 }
 0x1f4   : > { %v1244_v4 = vadd.f32 %v1492_v57, %v1243_v3 }
 0x1f6   : > { %v1253_v5 = vmax.f32 %v1244_v4, 0.0 }
 0x1f8   : > { %1262 = vst.msk [vmem:[%s2178_s29 + $0x38] sm:$0xff] %vm1254_vm13, %v1253_v5 }
 0x21d   : > { %v1226_v6 = vpop.f32.mrf.mxu0 }
 0x21e   : > { %v1227_v7 = vadd.f32 %v1492_v57, %v1226_v6 }
 0x220   : > { %v1246_v8 = vmax.f32 %v1227_v7, 0.0 }
 0x222   : > { %1255 = vst.msk [vmem:[%s2178_s29] sm:$0xff] %vm1254_vm13, %v1246_v8 }
 0x225   : > { %v1228_v9 = vpop.f32.mrf.mxu0  ;;  %v1231_v10 = vpop.f32.mrf.mxu1 }
 0x226   : > { %v1229_v11 = vadd.f32 %v1492_v57, %v1228_v9  ;;  %v1232_v12 = vadd.f32 %v1492_v57, %v1231_v10 }
 0x228   : > { %v1247_v13 = vmax.f32 %v1229_v11, 0.0  ;;  %v1248_v14 = vmax.f32 %v1232_v12, 0.0 }
 0x22a   : > { %1256 = vst.msk [vmem:[%s2178_s29 + $0x8] sm:$0xff] %vm1254_vm13, %v1247_v13 }
 0x22b   : > { %1257 = vst.msk [vmem:[%s2178_s29 + $0x10] sm:$0xff] %vm1254_vm13, %v1248_v14 }
 0x22d   : > { %v1233_v15 = vpop.f32.mrf.mxu1 }
 0x22e   : > { %v1234_v16 = vadd.f32 %v1492_v57, %v1233_v15 }
 0x230   : > { %v1249_v17 = vmax.f32 %v1234_v16, 0.0 }
 0x232   : > { %1258 = vst.msk [vmem:[%s2178_s29 + $0x18] sm:$0xff] %vm1254_vm13, %v1249_v17 }
 0x233   : > { %1520 = shalt.err (!%p1517_p3)
}
 0x234   : > { %s1567_s25 = smov 128   ;;  %s1568_s26 = smov 8  }
 0x235   : > { %1441 = dma.vmem_to_hbm [thread:$0]  (%p1627_p5), %s1277_s7, 1024, %s1279_s8, %s1264_s16, %s1567_s25, %s1567_s25, %s1568_s26  }
 0x236 PF: > { %p1447_p4 = scmp.ge.s32.totalorder %s1555_s15, 2  ;;  %s1293_s27 = sand.u32 1, %s1543_s12  }
 0x237   : > { %s1294_s28 = scalar_lea.sflag [#allocation5], %s1293_s27 }
 0x238   : > { %p1444_p7 = pnand %p1447_p4, %p1631_p6 }
 0x23a   : > { %p1445_p8 = pneg %p1444_p7 }
 0x23c   : > { %1538 = dma.done.wait (%p1445_p8), %s1294_s28, 1024  }
 0x23d   : > { %1540 = vsyncadd (%p1445_p8), %s1294_s28, 4294966272  ;;  %p13_p9 = scmp.ge.s32.totalorder %s1614_s18, 4   ;;  %s2236_s12 = smov %s1547_s13 }
 0x23e   : > { %s2237_s13 = smov %s1551_s14  ;;  %s2238_s14 = smov %s1625_s21 }
 0x23f   : > { %s2239_s15 = smov %s1614_s18  ;;  %15 = sbr.rel (!%p13_p9) target bundleno = 3 (0x3), region = 138 }
 0x244   :  { %1300 = vsyncpa [#allocation5], 1 }
 0x245   :  { %1302 = vsyncpa [#allocation5 + $0x1], 1 }

</bundles_post_ra>
